<compile_context>
chip_gen: v6e
topology: v6e:2x2x1
jax: 0.10.0
libtpu: 0.0.40
codegen_flags: <defaults>
</compile_context>

<pallas_src>
import functools

import numpy as np
import jax
import jax.numpy as jnp
from jax.experimental import pallas as pl
from jax.experimental.pallas import tpu as pltpu


# Layer configuration of the PyTorch Encoder:
#   Conv2d(3,16,7,s2,p3)+ReLU, Conv2d(16,32,3,1,1)+ReLU, MaxPool2d(2),
#   Conv2d(32,64,3,1,1)+ReLU, MaxPool2d(2), Conv2d(64,128,3,1,1)+ReLU,
#   Conv2d(128,128,1,1,0)
_CONV_CFG = [
    # (cin, cout, k, stride, pad, relu, maxpool_after)
    (3, 16, 7, 2, 3, True, False),
    (16, 32, 3, 1, 1, True, True),
    (32, 64, 3, 1, 1, True, True),
    (64, 128, 3, 1, 1, True, False),
    (128, 128, 1, 1, 0, False, False),
]

_BF16 = jnp.bfloat16
_F32 = jnp.float32
_TILE_N = 8          # samples per grid step (batch is padded up to a multiple)


# ----------------------------------------------------------------------------
# The fused Pallas kernel: one batch tile per grid step (specialized to 16x16)
# ----------------------------------------------------------------------------
def _encoder_kernel(
    xe_ref, xo_ref,                            # conv1 H-phase inputs (11T, 128) bf16
    t1_ref, t2_ref, t3_ref, t4_ref, t5_ref,    # block-Toeplitz weights (bf16)
    b1_ref, b2_ref, b3_ref, b4_ref, b5_ref,    # bias rows (1, lanes) f32
    out_ref,                                   # (2T, 256) f32
    x2_ref, x3_ref, x4_ref,                    # activation slabs, VMEM scratch (bf16)
    *, tile,
):
    T = tile
    # H-padding border rows must be re-zeroed every grid step (scratch persists
    # across steps); the interiors are fully overwritten below.  All slabs are
    # exactly 128 lanes wide, so these are unmasked full-lane stores.
    z = jnp.zeros((T, 128), _BF16)
    x2_ref[0:T, :] = z
    x2_ref[9 * T:10 * T, :] = z
    x3_ref[0:T, :] = z
    x3_ref[5 * T:6 * T, :] = z
    x4_ref[0:T, :] = z
    x4_ref[3 * T:4 * T, :] = z

    # --- conv1: 3->16, 7x7, stride 2, pad 3, ReLU ----------------------------
    # One (8T, 128) @ (128, 128) dot per kernel row; the even/odd H phases make
    # every tap a contiguous batch-merged row slice.
    acc = jnp.broadcast_to(b1_ref[...], (8 * T, 128))
    for i in range(7):
        src = xe_ref if i % 2 == 0 else xo_ref
        a = (i // 2) * T
        acc = acc + jnp.dot(src[a:a + 8 * T, :], t1_ref[i],
                            preferred_element_type=_F32)
    x2_ref[T:9 * T, :] = jnp.maximum(acc, 0.0).astype(_BF16)

    # --- conv2: 16->32, 3x3, pad 1, ReLU + fused 2x2 max-pool ----------------
    # Toeplitz output columns are permuted so even output-W positions occupy
    # lanes [0,128) and odd ones lanes [128,256): the W-pool is a single max of
    # two aligned 128-lane halves (no lane shuffles, no masked stores).
    acc = jnp.broadcast_to(b2_ref[...], (8 * T, 256))
    for i in range(3):
        acc = acc + jnp.dot(x2_ref[i * T:(i + 8) * T, :], t2_ref[i],
                            preferred_element_type=_F32)
    y2 = jnp.maximum(acc, 0.0)                                  # (8T, 256)
    wp2 = jnp.maximum(y2[:, :128], y2[:, 128:])                 # W-pool -> (8T, 128)
    for hp in range(4):                                         # H-pool -> x3 interior
        rmax = jnp.maximum(wp2[(2 * hp) * T:(2 * hp + 1) * T, :],
                           wp2[(2 * hp + 1) * T:(2 * hp + 2) * T, :])
        x3_ref[(hp + 1) * T:(hp + 2) * T, :] = rmax.astype(_BF16)

    # --- conv3: 32->64, 3x3, pad 1, ReLU + fused 2x2 max-pool ----------------
    acc = jnp.broadcast_to(b3_ref[...], (4 * T, 256))
    for i in range(3):
        acc = acc + jnp.dot(x3_ref[i * T:(i + 4) * T, :], t3_ref[i],
                            preferred_element_type=_F32)
    y3 = jnp.maximum(acc, 0.0)                                  # (4T, 256)
    wp3 = jnp.maximum(y3[:, :128], y3[:, 128:])                 # (4T, 128)
    for hp in range(2):
        rmax = jnp.maximum(wp3[(2 * hp) * T:(2 * hp + 1) * T, :],
                           wp3[(2 * hp + 1) * T:(2 * hp + 2) * T, :])
        x4_ref[(hp + 1) * T:(hp + 2) * T, :] = rmax.astype(_BF16)

    # --- conv4: 64->128, 3x3, pad 1, ReLU ------------------------------------
    acc = jnp.broadcast_to(b4_ref[...], (2 * T, 256))
    for i in range(3):
        acc = acc + jnp.dot(x4_ref[i * T:(i + 2) * T, :], t4_ref[i],
                            preferred_element_type=_F32)
    y4 = jnp.maximum(acc, 0.0).astype(_BF16)                    # (2T, 2*128)

    # --- conv5: 128->128, 1x1 (block-diagonal over the 2 W positions) --------
    out_ref[...] = (jnp.dot(y4, t5_ref[...], preferred_element_type=_F32)
                    + b5_ref[...])


# ----------------------------------------------------------------------------
# Host-side one-time weight transform (equivalent of loading the nn.Module)
# ----------------------------------------------------------------------------
def _toeplitz(w_oihw, *, win, wo, stride, pad, k_lanes, out_cols=None):
    """Fold the conv's W axis (zero padding and stride included) into
    per-kernel-row block-Toeplitz matrices:
        T[i, wi*Cin + ci, out_cols[o]*Cout + co] = W[co, ci, i, j]
    with wi = stride*o + j - pad; taps landing in the W zero-padding are simply
    dropped (zero rows).  `out_cols` permutes output W positions (used to route
    max-pool partners into the two 128-lane output halves)."""
    w = np.asarray(w_oihw, np.float32)
    cout, cin, kh, kw = w.shape
    if out_cols is None:
        out_cols = list(range(wo))
    t = np.zeros((kh, k_lanes, wo * cout), np.float32)
    for i in range(kh):
        for o in range(wo):
            oc = out_cols[o]
            for j in range(kw):
                wi = stride * o + j - pad
                if 0 <= wi < win:
                    t[i, wi * cin:(wi + 1) * cin,
                      oc * cout:(oc + 1) * cout] = w[:, :, i, j].T
    return t


def prepare_params(params):
    """Build bf16 Toeplitz weights and f32 bias rows (done once, host-side)."""
    (w1, b1), (w2, b2), (w3, b3), (w4, b4), (w5, b5) = params
    pool_split = lambda wo: [(o % 2) * (wo // 2) + o // 2 for o in range(wo)]
    t1 = _toeplitz(w1, win=16, wo=8, stride=2, pad=3, k_lanes=128)
    t2 = _toeplitz(w2, win=8, wo=8, stride=1, pad=1, k_lanes=128,
                   out_cols=pool_split(8))
    t3 = _toeplitz(w3, win=4, wo=4, stride=1, pad=1, k_lanes=128,
                   out_cols=pool_split(4))
    t4 = _toeplitz(w4, win=2, wo=2, stride=1, pad=1, k_lanes=128)
    t5 = _toeplitz(w5, win=2, wo=2, stride=1, pad=0, k_lanes=256)[0]   # block-diag
    rows = lambda b, rep: np.tile(np.asarray(b, np.float32), rep)[None, :]
    return (
        jnp.asarray(t1, _BF16), jnp.asarray(t2, _BF16), jnp.asarray(t3, _BF16),
        jnp.asarray(t4, _BF16), jnp.asarray(t5, _BF16),
        jnp.asarray(rows(b1, 8), _F32), jnp.asarray(rows(b2, 8), _F32),
        jnp.asarray(rows(b3, 4), _F32), jnp.asarray(rows(b4, 2), _F32),
        jnp.asarray(rows(b5, 2), _F32),
    )


# ----------------------------------------------------------------------------
# Forward pass: input-side XLA glue + one fused, batch-tiled pallas_call
# ----------------------------------------------------------------------------
@jax.jit
def encoder_forward(img_nchw, prep):
    n, c, h, w = img_nchw.shape
    assert (c, h, w) == (3, 16, 16), "kernel is specialized to 3x16x16 inputs"
    T = min(_TILE_N, n)
    num_tiles = -(-n // T)
    n_pad = num_tiles * T

    # NCHW -> NHWC (bf16 MXU operands), pad batch to a tile multiple, pad H by 3
    # for conv1 and split into even/odd H phases so the stride-2 conv becomes
    # contiguous batch-merged row reads in-kernel.  Rows inside a tile are laid
    # out h-major / batch-minor; W padding is absorbed into the Toeplitz weights
    # and the conv1 K dimension is zero-padded from 16*3=48 to 128 lanes.
    x = jnp.transpose(img_nchw, (0, 2, 3, 1)).astype(_BF16)
    if n_pad != n:
        x = jnp.pad(x, ((0, n_pad - n), (0, 0), (0, 0), (0, 0)))
    xp = jnp.pad(x, ((0, 0), (3, 3), (0, 0), (0, 0)))              # (Np, 22, 16, 3)

    def phase_slab(ph):                                            # (Np, 11, 16, 3)
        v = ph.reshape(num_tiles, T, 11, 48).transpose(0, 2, 1, 3)
        v = v.reshape(num_tiles, 11 * T, 48)
        return jnp.pad(v, ((0, 0), (0, 0), (0, 128 - 48)))

    xe = phase_slab(xp[:, 0::2])
    xo = phase_slab(xp[:, 1::2])

    t1, t2, t3, t4, t5, b1, b2, b3, b4, b5 = prep
    consts = (t1, t2, t3, t4, t5, b1, b2, b3, b4, b5)
    operands = (xe, xo) + consts

    def batch_spec(rows, lanes):
        return pl.BlockSpec((None, rows, lanes), lambda b: (b, 0, 0))

    def full_spec(a):
        return pl.BlockSpec(a.shape, lambda b, nd=a.ndim: (0,) * nd)

    flops = 2 * n_pad * (7 * 8 * 128 * 128 + 3 * 8 * 128 * 256
                         + 3 * 4 * 128 * 256 + 3 * 2 * 128 * 256
                         + 2 * 256 * 256)
    bytes_accessed = sum(int(np.prod(a.shape)) * a.dtype.itemsize
                         for a in operands) + num_tiles * 2 * T * 256 * 4

    out2d = pl.pallas_call(
        functools.partial(_encoder_kernel, tile=T),
        grid=(num_tiles,),
        out_shape=jax.ShapeDtypeStruct((num_tiles, 2 * T, 256), _F32),
        in_specs=[batch_spec(11 * T, 128), batch_spec(11 * T, 128)]
                 + [full_spec(a) for a in consts],
        out_specs=batch_spec(2 * T, 256),
        scratch_shapes=[
            pltpu.VMEM((10 * T, 128), _BF16),   # conv2 input slab (H-padded)
            pltpu.VMEM((6 * T, 128), _BF16),    # conv3 input slab (H-padded)
            pltpu.VMEM((4 * T, 128), _BF16),    # conv4 input slab (H-padded)
        ],
        compiler_params=pltpu.CompilerParams(
            dimension_semantics=("parallel",)),
        cost_estimate=pl.CostEstimate(flops=flops, transcendentals=0,
                                      bytes_accessed=bytes_accessed),
    )(*operands)

    # (num_tiles, 2T, 2*128) with rows h-major / batch-minor  ->  NCHW
    o = out2d.reshape(num_tiles, 2, T, 2, 128).transpose(0, 2, 4, 1, 3)
    return o.reshape(n_pad, 128, 2, 2)[:n]


# ----------------------------------------------------------------------------
# Parameter init (PyTorch default-style) and pure-JAX references
# ----------------------------------------------------------------------------
def init_params(key):
    params = []
    for (cin, cout, k, *_rest) in _CONV_CFG:
        key, k1, k2 = jax.random.split(key, 3)
        bound = 1.0 / float(np.sqrt(cin * k * k))
        w = jax.random.uniform(k1, (cout, cin, k, k), _F32, -bound, bound)
        b = jax.random.uniform(k2, (cout,), _F32, -bound, bound)
        params.append((w, b))
    return params


def encoder_reference(img_nchw, params, match_bf16=False):
    """match_bf16=True reproduces the kernel's operand precision exactly
    (bf16 conv operands / activations, f32 accumulation, bias, ReLU, pool)."""
    x = img_nchw
    for (wgt, b), (_, _, _, stride, pad, relu, pool) in zip(params, _CONV_CFG):
        if match_bf16:
            x = x.astype(_BF16).astype(_F32)
            wgt = wgt.astype(_BF16).astype(_F32)
        x = jax.lax.conv_general_dilated(
            x, wgt, (stride, stride), [(pad, pad), (pad, pad)],
            dimension_numbers=("NCHW", "OIHW", "NCHW"),
            precision=jax.lax.Precision.HIGHEST)
        x = x + b.reshape(1, -1, 1, 1)
        if relu:
            x = jnp.maximum(x, 0.0)
        if pool:
            x = jax.lax.reduce_window(x, -jnp.inf, jax.lax.max,
                                      (1, 1, 2, 2), (1, 1, 2, 2), "VALID")
    return x


# ----------------------------------------------------------------------------
if __name__ == "__main__":
    key = jax.random.PRNGKey(0)
    k_img, k_par = jax.random.split(key)

    img = jax.random.normal(k_img, (2, 3, 16, 16), dtype=_F32)   # NCHW
    params = init_params(k_par)
    prep = prepare_params(params)                                # one-time weight prep

    out = jax.block_until_ready(encoder_forward(img, prep))
    assert out.shape == (2, 128, 2, 2), out.shape

    # Tight check against a precision-matched reference (bf16 operands, f32 acc).
    ref = encoder_reference(img, params, match_bf16=True)
    err = float(jnp.max(jnp.abs(out - ref)))
    assert jnp.allclose(out, ref, rtol=1e-3, atol=1e-3), err

    # Loose sanity check against the full-f32 PyTorch-equivalent reference
    # (kernel intentionally feeds the MXU bf16 operands).
    ref32 = encoder_reference(img, params, match_bf16=False)
    err32 = float(jnp.max(jnp.abs(out - ref32)))
    assert jnp.allclose(out, ref32, rtol=1e-1, atol=1e-1), err32

    print("KERNEL_OK")
</pallas_src>

<mosaic_0001>
module attributes {stable_mosaic.version = 11 : i64} {
  func.func @_encoder_kernel(%arg0: i32, %arg1: memref<1x22x128xbf16, #tpu.memory_space<vmem>>, %arg2: memref<1x22x128xbf16, #tpu.memory_space<vmem>>, %arg3: memref<7x128x128xbf16, #tpu.memory_space<vmem>>, %arg4: memref<3x128x256xbf16, #tpu.memory_space<vmem>>, %arg5: memref<3x128x256xbf16, #tpu.memory_space<vmem>>, %arg6: memref<3x128x256xbf16, #tpu.memory_space<vmem>>, %arg7: memref<256x256xbf16, #tpu.memory_space<vmem>>, %arg8: memref<1x128xf32, #tpu.memory_space<vmem>>, %arg9: memref<1x256xf32, #tpu.memory_space<vmem>>, %arg10: memref<1x256xf32, #tpu.memory_space<vmem>>, %arg11: memref<1x256xf32, #tpu.memory_space<vmem>>, %arg12: memref<1x256xf32, #tpu.memory_space<vmem>>, %arg13: memref<1x4x256xf32, #tpu.memory_space<vmem>>, %arg14: memref<20x128xbf16, #tpu.memory_space<vmem>>, %arg15: memref<12x128xbf16, #tpu.memory_space<vmem>>, %arg16: memref<8x128xbf16, #tpu.memory_space<vmem>>) attributes {dimension_semantics = [#tpu.dimension_semantics<parallel>], iteration_bounds = array<i64: 1>, scalar_prefetch = 0 : i64, scratch_operands = 3 : i64, tpu.core_type = #tpu.core_type<tc>, window_params = [{transform_indices = @transform_0, window_bounds = array<i64: 1, 22, 128>}, {transform_indices = @transform_1, window_bounds = array<i64: 1, 22, 128>}, {pipeline_mode = #tpu.pipeline_mode<synchronous>, transform_indices = @transform_2, window_bounds = array<i64: 7, 128, 128>}, {pipeline_mode = #tpu.pipeline_mode<synchronous>, transform_indices = @transform_3, window_bounds = array<i64: 3, 128, 256>}, {pipeline_mode = #tpu.pipeline_mode<synchronous>, transform_indices = @transform_4, window_bounds = array<i64: 3, 128, 256>}, {pipeline_mode = #tpu.pipeline_mode<synchronous>, transform_indices = @transform_5, window_bounds = array<i64: 3, 128, 256>}, {pipeline_mode = #tpu.pipeline_mode<synchronous>, transform_indices = @transform_6, window_bounds = array<i64: 256, 256>}, {pipeline_mode = #tpu.pipeline_mode<synchronous>, transform_indices = @transform_7, window_bounds = array<i64: 1, 128>}, {pipeline_mode = #tpu.pipeline_mode<synchronous>, transform_indices = @transform_8, window_bounds = array<i64: 1, 256>}, {pipeline_mode = #tpu.pipeline_mode<synchronous>, transform_indices = @transform_9, window_bounds = array<i64: 1, 256>}, {pipeline_mode = #tpu.pipeline_mode<synchronous>, transform_indices = @transform_10, window_bounds = array<i64: 1, 256>}, {pipeline_mode = #tpu.pipeline_mode<synchronous>, transform_indices = @transform_11, window_bounds = array<i64: 1, 256>}, {transform_indices = @transform_12, window_bounds = array<i64: 1, 4, 256>}]} {
    %cst = arith.constant 0.000000e+00 : bf16
    %0 = vector.broadcast %cst : bf16 to vector<2x128xbf16>
    %c0 = arith.constant 0 : index
    %c0_0 = arith.constant 0 : index
    %1 = vector.load %arg14[%c0, %c0_0] : memref<20x128xbf16, #tpu.memory_space<vmem>>, vector<2x128xbf16>
    tpu.vector_store %arg14[%c0, %c0_0], %0 {strides = array<i32>} : memref<20x128xbf16, #tpu.memory_space<vmem>>, vector<2x128xbf16>,
    %c18 = arith.constant 18 : index
    %c0_1 = arith.constant 0 : index
    %2 = vector.load %arg14[%c18, %c0_1] : memref<20x128xbf16, #tpu.memory_space<vmem>>, vector<2x128xbf16>
    tpu.vector_store %arg14[%c18, %c0_1], %0 {strides = array<i32>} : memref<20x128xbf16, #tpu.memory_space<vmem>>, vector<2x128xbf16>,
    %c0_2 = arith.constant 0 : index
    %c0_3 = arith.constant 0 : index
    %3 = vector.load %arg15[%c0_2, %c0_3] : memref<12x128xbf16, #tpu.memory_space<vmem>>, vector<2x128xbf16>
    tpu.vector_store %arg15[%c0_2, %c0_3], %0 {strides = array<i32>} : memref<12x128xbf16, #tpu.memory_space<vmem>>, vector<2x128xbf16>,
    %c10 = arith.constant 10 : index
    %c0_4 = arith.constant 0 : index
    %4 = vector.load %arg15[%c10, %c0_4] : memref<12x128xbf16, #tpu.memory_space<vmem>>, vector<2x128xbf16>
    tpu.vector_store %arg15[%c10, %c0_4], %0 {strides = array<i32>} : memref<12x128xbf16, #tpu.memory_space<vmem>>, vector<2x128xbf16>,
    %c0_5 = arith.constant 0 : index
    %c0_6 = arith.constant 0 : index
    %5 = vector.load %arg16[%c0_5, %c0_6] : memref<8x128xbf16, #tpu.memory_space<vmem>>, vector<2x128xbf16>
    tpu.vector_store %arg16[%c0_5, %c0_6], %0 {strides = array<i32>} : memref<8x128xbf16, #tpu.memory_space<vmem>>, vector<2x128xbf16>,
    %c6 = arith.constant 6 : index
    %c0_7 = arith.constant 0 : index
    %6 = vector.load %arg16[%c6, %c0_7] : memref<8x128xbf16, #tpu.memory_space<vmem>>, vector<2x128xbf16>
    tpu.vector_store %arg16[%c6, %c0_7], %0 {strides = array<i32>} : memref<8x128xbf16, #tpu.memory_space<vmem>>, vector<2x128xbf16>,
    %c0_8 = arith.constant 0 : index
    %c0_9 = arith.constant 0 : index
    %7 = vector.load %arg8[%c0_8, %c0_9] : memref<1x128xf32, #tpu.memory_space<vmem>>, vector<1x128xf32>
    %8 = vector.shape_cast %7 : vector<1x128xf32> to vector<1x128xf32>
    %9 = vector.broadcast %8 : vector<1x128xf32> to vector<16x128xf32>
    %c0_10 = arith.constant 0 : index
    %c0_11 = arith.constant 0 : index
    %c0_12 = arith.constant 0 : index
    %10 = vector.load %arg1[%c0_10, %c0_11, %c0_12] : memref<1x22x128xbf16, #tpu.memory_space<vmem>>, vector<1x16x128xbf16>
    %11 = vector.shape_cast %10 : vector<1x16x128xbf16> to vector<16x128xbf16>
    %c0_13 = arith.constant 0 : index
    %c0_14 = arith.constant 0 : index
    %c0_15 = arith.constant 0 : index
    %12 = vector.load %arg3[%c0_13, %c0_14, %c0_15] : memref<7x128x128xbf16, #tpu.memory_space<vmem>>, vector<1x128x128xbf16>
    %13 = vector.shape_cast %12 : vector<1x128x128xbf16> to vector<128x128xbf16>
    %cst_16 = arith.constant dense<0.000000e+00> : vector<16x128xf32>
    %14 = tpu.matmul %11, %13, %cst_16 {dimension_numbers = #tpu.dot_dimension_numbers<[1], [0], [0], [1], [0, 0, 1, 1], [], []>} : vector<16x128xbf16>, vector<128x128xbf16>, vector<16x128xf32> -> vector<16x128xf32>
    %15 = arith.addf %9, %14 : vector<16x128xf32>
    %c0_17 = arith.constant 0 : index
    %c0_18 = arith.constant 0 : index
    %c0_19 = arith.constant 0 : index
    %16 = vector.load %arg2[%c0_17, %c0_18, %c0_19] : memref<1x22x128xbf16, #tpu.memory_space<vmem>>, vector<1x16x128xbf16>
    %17 = vector.shape_cast %16 : vector<1x16x128xbf16> to vector<16x128xbf16>
    %c1 = arith.constant 1 : index
    %c0_20 = arith.constant 0 : index
    %c0_21 = arith.constant 0 : index
    %18 = vector.load %arg3[%c1, %c0_20, %c0_21] : memref<7x128x128xbf16, #tpu.memory_space<vmem>>, vector<1x128x128xbf16>
    %19 = vector.shape_cast %18 : vector<1x128x128xbf16> to vector<128x128xbf16>
    %cst_22 = arith.constant dense<0.000000e+00> : vector<16x128xf32>
    %20 = tpu.matmul %17, %19, %cst_22 {dimension_numbers = #tpu.dot_dimension_numbers<[1], [0], [0], [1], [0, 0, 1, 1], [], []>} : vector<16x128xbf16>, vector<128x128xbf16>, vector<16x128xf32> -> vector<16x128xf32>
    %21 = arith.addf %15, %20 : vector<16x128xf32>
    %c0_23 = arith.constant 0 : index
    %c2 = arith.constant 2 : index
    %c0_24 = arith.constant 0 : index
    %22 = vector.load %arg1[%c0_23, %c2, %c0_24] : memref<1x22x128xbf16, #tpu.memory_space<vmem>>, vector<1x16x128xbf16>
    %23 = vector.shape_cast %22 : vector<1x16x128xbf16> to vector<16x128xbf16>
    %c2_25 = arith.constant 2 : index
    %c0_26 = arith.constant 0 : index
    %c0_27 = arith.constant 0 : index
    %24 = vector.load %arg3[%c2_25, %c0_26, %c0_27] : memref<7x128x128xbf16, #tpu.memory_space<vmem>>, vector<1x128x128xbf16>
    %25 = vector.shape_cast %24 : vector<1x128x128xbf16> to vector<128x128xbf16>
    %cst_28 = arith.constant dense<0.000000e+00> : vector<16x128xf32>
    %26 = tpu.matmul %23, %25, %cst_28 {dimension_numbers = #tpu.dot_dimension_numbers<[1], [0], [0], [1], [0, 0, 1, 1], [], []>} : vector<16x128xbf16>, vector<128x128xbf16>, vector<16x128xf32> -> vector<16x128xf32>
    %27 = arith.addf %21, %26 : vector<16x128xf32>
    %c0_29 = arith.constant 0 : index
    %c2_30 = arith.constant 2 : index
    %c0_31 = arith.constant 0 : index
    %28 = vector.load %arg2[%c0_29, %c2_30, %c0_31] : memref<1x22x128xbf16, #tpu.memory_space<vmem>>, vector<1x16x128xbf16>
    %29 = vector.shape_cast %28 : vector<1x16x128xbf16> to vector<16x128xbf16>
    %c3 = arith.constant 3 : index
    %c0_32 = arith.constant 0 : index
    %c0_33 = arith.constant 0 : index
    %30 = vector.load %arg3[%c3, %c0_32, %c0_33] : memref<7x128x128xbf16, #tpu.memory_space<vmem>>, vector<1x128x128xbf16>
    %31 = vector.shape_cast %30 : vector<1x128x128xbf16> to vector<128x128xbf16>
    %cst_34 = arith.constant dense<0.000000e+00> : vector<16x128xf32>
    %32 = tpu.matmul %29, %31, %cst_34 {dimension_numbers = #tpu.dot_dimension_numbers<[1], [0], [0], [1], [0, 0, 1, 1], [], []>} : vector<16x128xbf16>, vector<128x128xbf16>, vector<16x128xf32> -> vector<16x128xf32>
    %33 = arith.addf %27, %32 : vector<16x128xf32>
    %c0_35 = arith.constant 0 : index
    %c4 = arith.constant 4 : index
    %c0_36 = arith.constant 0 : index
    %34 = vector.load %arg1[%c0_35, %c4, %c0_36] : memref<1x22x128xbf16, #tpu.memory_space<vmem>>, vector<1x16x128xbf16>
    %35 = vector.shape_cast %34 : vector<1x16x128xbf16> to vector<16x128xbf16>
    %c4_37 = arith.constant 4 : index
    %c0_38 = arith.constant 0 : index
    %c0_39 = arith.constant 0 : index
    %36 = vector.load %arg3[%c4_37, %c0_38, %c0_39] : memref<7x128x128xbf16, #tpu.memory_space<vmem>>, vector<1x128x128xbf16>
    %37 = vector.shape_cast %36 : vector<1x128x128xbf16> to vector<128x128xbf16>
    %cst_40 = arith.constant dense<0.000000e+00> : vector<16x128xf32>
    %38 = tpu.matmul %35, %37, %cst_40 {dimension_numbers = #tpu.dot_dimension_numbers<[1], [0], [0], [1], [0, 0, 1, 1], [], []>} : vector<16x128xbf16>, vector<128x128xbf16>, vector<16x128xf32> -> vector<16x128xf32>
    %39 = arith.addf %33, %38 : vector<16x128xf32>
    %c0_41 = arith.constant 0 : index
    %c4_42 = arith.constant 4 : index
    %c0_43 = arith.constant 0 : index
    %40 = vector.load %arg2[%c0_41, %c4_42, %c0_43] : memref<1x22x128xbf16, #tpu.memory_space<vmem>>, vector<1x16x128xbf16>
    %41 = vector.shape_cast %40 : vector<1x16x128xbf16> to vector<16x128xbf16>
    %c5 = arith.constant 5 : index
    %c0_44 = arith.constant 0 : index
    %c0_45 = arith.constant 0 : index
    %42 = vector.load %arg3[%c5, %c0_44, %c0_45] : memref<7x128x128xbf16, #tpu.memory_space<vmem>>, vector<1x128x128xbf16>
    %43 = vector.shape_cast %42 : vector<1x128x128xbf16> to vector<128x128xbf16>
    %cst_46 = arith.constant dense<0.000000e+00> : vector<16x128xf32>
    %44 = tpu.matmul %41, %43, %cst_46 {dimension_numbers = #tpu.dot_dimension_numbers<[1], [0], [0], [1], [0, 0, 1, 1], [], []>} : vector<16x128xbf16>, vector<128x128xbf16>, vector<16x128xf32> -> vector<16x128xf32>
    %45 = arith.addf %39, %44 : vector<16x128xf32>
    %c0_47 = arith.constant 0 : index
    %c6_48 = arith.constant 6 : index
    %c0_49 = arith.constant 0 : index
    %46 = vector.load %arg1[%c0_47, %c6_48, %c0_49] : memref<1x22x128xbf16, #tpu.memory_space<vmem>>, vector<1x16x128xbf16>
    %47 = vector.shape_cast %46 : vector<1x16x128xbf16> to vector<16x128xbf16>
    %c6_50 = arith.constant 6 : index
    %c0_51 = arith.constant 0 : index
    %c0_52 = arith.constant 0 : index
    %48 = vector.load %arg3[%c6_50, %c0_51, %c0_52] : memref<7x128x128xbf16, #tpu.memory_space<vmem>>, vector<1x128x128xbf16>
    %49 = vector.shape_cast %48 : vector<1x128x128xbf16> to vector<128x128xbf16>
    %cst_53 = arith.constant dense<0.000000e+00> : vector<16x128xf32>
    %50 = tpu.matmul %47, %49, %cst_53 {dimension_numbers = #tpu.dot_dimension_numbers<[1], [0], [0], [1], [0, 0, 1, 1], [], []>} : vector<16x128xbf16>, vector<128x128xbf16>, vector<16x128xf32> -> vector<16x128xf32>
    %51 = arith.addf %45, %50 : vector<16x128xf32>
    %cst_54 = arith.constant 0.000000e+00 : f32
    %52 = vector.broadcast %cst_54 : f32 to vector<16x128xf32>
    %53 = arith.maximumf %51, %52 : vector<16x128xf32>
    %54 = arith.truncf %53 : vector<16x128xf32> to vector<16x128xbf16>
    %c2_55 = arith.constant 2 : index
    %c0_56 = arith.constant 0 : index
    %55 = vector.load %arg14[%c2_55, %c0_56] : memref<20x128xbf16, #tpu.memory_space<vmem>>, vector<16x128xbf16>
    tpu.vector_store %arg14[%c2_55, %c0_56], %54 {strides = array<i32>} : memref<20x128xbf16, #tpu.memory_space<vmem>>, vector<16x128xbf16>,
    %c0_57 = arith.constant 0 : index
    %c0_58 = arith.constant 0 : index
    %56 = vector.load %arg9[%c0_57, %c0_58] : memref<1x256xf32, #tpu.memory_space<vmem>>, vector<1x256xf32>
    %57 = vector.shape_cast %56 : vector<1x256xf32> to vector<1x256xf32>
    %58 = vector.broadcast %57 : vector<1x256xf32> to vector<16x256xf32>
    %c0_59 = arith.constant 0 : index
    %c0_60 = arith.constant 0 : index
    %59 = vector.load %arg14[%c0_59, %c0_60] : memref<20x128xbf16, #tpu.memory_space<vmem>>, vector<16x128xbf16>
    %c0_61 = arith.constant 0 : index
    %c0_62 = arith.constant 0 : index
    %c0_63 = arith.constant 0 : index
    %60 = vector.load %arg4[%c0_61, %c0_62, %c0_63] : memref<3x128x256xbf16, #tpu.memory_space<vmem>>, vector<1x128x256xbf16>
    %61 = vector.shape_cast %60 : vector<1x128x256xbf16> to vector<128x256xbf16>
    %cst_64 = arith.constant dense<0.000000e+00> : vector<16x256xf32>
    %62 = tpu.matmul %59, %61, %cst_64 {dimension_numbers = #tpu.dot_dimension_numbers<[1], [0], [0], [1], [0, 0, 1, 1], [], []>} : vector<16x128xbf16>, vector<128x256xbf16>, vector<16x256xf32> -> vector<16x256xf32>
    %63 = arith.addf %58, %62 : vector<16x256xf32>
    %c2_65 = arith.constant 2 : index
    %c0_66 = arith.constant 0 : index
    %64 = vector.load %arg14[%c2_65, %c0_66] : memref<20x128xbf16, #tpu.memory_space<vmem>>, vector<16x128xbf16>
    %c1_67 = arith.constant 1 : index
    %c0_68 = arith.constant 0 : index
    %c0_69 = arith.constant 0 : index
    %65 = vector.load %arg4[%c1_67, %c0_68, %c0_69] : memref<3x128x256xbf16, #tpu.memory_space<vmem>>, vector<1x128x256xbf16>
    %66 = vector.shape_cast %65 : vector<1x128x256xbf16> to vector<128x256xbf16>
    %cst_70 = arith.constant dense<0.000000e+00> : vector<16x256xf32>
    %67 = tpu.matmul %64, %66, %cst_70 {dimension_numbers = #tpu.dot_dimension_numbers<[1], [0], [0], [1], [0, 0, 1, 1], [], []>} : vector<16x128xbf16>, vector<128x256xbf16>, vector<16x256xf32> -> vector<16x256xf32>
    %68 = arith.addf %63, %67 : vector<16x256xf32>
    %c4_71 = arith.constant 4 : index
    %c0_72 = arith.constant 0 : index
    %69 = vector.load %arg14[%c4_71, %c0_72] : memref<20x128xbf16, #tpu.memory_space<vmem>>, vector<16x128xbf16>
    %c2_73 = arith.constant 2 : index
    %c0_74 = arith.constant 0 : index
    %c0_75 = arith.constant 0 : index
    %70 = vector.load %arg4[%c2_73, %c0_74, %c0_75] : memref<3x128x256xbf16, #tpu.memory_space<vmem>>, vector<1x128x256xbf16>
    %71 = vector.shape_cast %70 : vector<1x128x256xbf16> to vector<128x256xbf16>
    %cst_76 = arith.constant dense<0.000000e+00> : vector<16x256xf32>
    %72 = tpu.matmul %69, %71, %cst_76 {dimension_numbers = #tpu.dot_dimension_numbers<[1], [0], [0], [1], [0, 0, 1, 1], [], []>} : vector<16x128xbf16>, vector<128x256xbf16>, vector<16x256xf32> -> vector<16x256xf32>
    %73 = arith.addf %68, %72 : vector<16x256xf32>
    %cst_77 = arith.constant 0.000000e+00 : f32
    %74 = vector.broadcast %cst_77 : f32 to vector<16x256xf32>
    %75 = arith.maximumf %73, %74 : vector<16x256xf32>
    %76 = vector.extract_strided_slice %75 {offsets = [0, 0], sizes = [16, 128], strides = [1, 1]} : vector<16x256xf32> to vector<16x128xf32>
    %77 = vector.extract_strided_slice %75 {offsets = [0, 128], sizes = [16, 128], strides = [1, 1]} : vector<16x256xf32> to vector<16x128xf32>
    %78 = arith.maximumf %76, %77 : vector<16x128xf32>
    %79 = vector.extract_strided_slice %78 {offsets = [0, 0], sizes = [2, 128], strides = [1, 1]} : vector<16x128xf32> to vector<2x128xf32>
    %80 = vector.extract_strided_slice %78 {offsets = [2, 0], sizes = [2, 128], strides = [1, 1]} : vector<16x128xf32> to vector<2x128xf32>
    %81 = arith.maximumf %79, %80 : vector<2x128xf32>
    %82 = arith.truncf %81 : vector<2x128xf32> to vector<2x128xbf16>
    %c2_78 = arith.constant 2 : index
    %c0_79 = arith.constant 0 : index
    %83 = vector.load %arg15[%c2_78, %c0_79] : memref<12x128xbf16, #tpu.memory_space<vmem>>, vector<2x128xbf16>
    tpu.vector_store %arg15[%c2_78, %c0_79], %82 {strides = array<i32>} : memref<12x128xbf16, #tpu.memory_space<vmem>>, vector<2x128xbf16>,
    %84 = vector.extract_strided_slice %78 {offsets = [4, 0], sizes = [2, 128], strides = [1, 1]} : vector<16x128xf32> to vector<2x128xf32>
    %85 = vector.extract_strided_slice %78 {offsets = [6, 0], sizes = [2, 128], strides = [1, 1]} : vector<16x128xf32> to vector<2x128xf32>
    %86 = arith.maximumf %84, %85 : vector<2x128xf32>
    %87 = arith.truncf %86 : vector<2x128xf32> to vector<2x128xbf16>
    %c4_80 = arith.constant 4 : index
    %c0_81 = arith.constant 0 : index
    %88 = vector.load %arg15[%c4_80, %c0_81] : memref<12x128xbf16, #tpu.memory_space<vmem>>, vector<2x128xbf16>
    tpu.vector_store %arg15[%c4_80, %c0_81], %87 {strides = array<i32>} : memref<12x128xbf16, #tpu.memory_space<vmem>>, vector<2x128xbf16>,
    %89 = vector.extract_strided_slice %78 {offsets = [8, 0], sizes = [2, 128], strides = [1, 1]} : vector<16x128xf32> to vector<2x128xf32>
    %90 = vector.extract_strided_slice %78 {offsets = [10, 0], sizes = [2, 128], strides = [1, 1]} : vector<16x128xf32> to vector<2x128xf32>
    %91 = arith.maximumf %89, %90 : vector<2x128xf32>
    %92 = arith.truncf %91 : vector<2x128xf32> to vector<2x128xbf16>
    %c6_82 = arith.constant 6 : index
    %c0_83 = arith.constant 0 : index
    %93 = vector.load %arg15[%c6_82, %c0_83] : memref<12x128xbf16, #tpu.memory_space<vmem>>, vector<2x128xbf16>
    tpu.vector_store %arg15[%c6_82, %c0_83], %92 {strides = array<i32>} : memref<12x128xbf16, #tpu.memory_space<vmem>>, vector<2x128xbf16>,
    %94 = vector.extract_strided_slice %78 {offsets = [12, 0], sizes = [2, 128], strides = [1, 1]} : vector<16x128xf32> to vector<2x128xf32>
    %95 = vector.extract_strided_slice %78 {offsets = [14, 0], sizes = [2, 128], strides = [1, 1]} : vector<16x128xf32> to vector<2x128xf32>
    %96 = arith.maximumf %94, %95 : vector<2x128xf32>
    %97 = arith.truncf %96 : vector<2x128xf32> to vector<2x128xbf16>
    %c8 = arith.constant 8 : index
    %c0_84 = arith.constant 0 : index
    %98 = vector.load %arg15[%c8, %c0_84] : memref<12x128xbf16, #tpu.memory_space<vmem>>, vector<2x128xbf16>
    tpu.vector_store %arg15[%c8, %c0_84], %97 {strides = array<i32>} : memref<12x128xbf16, #tpu.memory_space<vmem>>, vector<2x128xbf16>,
    %c0_85 = arith.constant 0 : index
    %c0_86 = arith.constant 0 : index
    %99 = vector.load %arg10[%c0_85, %c0_86] : memref<1x256xf32, #tpu.memory_space<vmem>>, vector<1x256xf32>
    %100 = vector.shape_cast %99 : vector<1x256xf32> to vector<1x256xf32>
    %101 = vector.broadcast %100 : vector<1x256xf32> to vector<8x256xf32>
    %c0_87 = arith.constant 0 : index
    %c0_88 = arith.constant 0 : index
    %102 = vector.load %arg15[%c0_87, %c0_88] : memref<12x128xbf16, #tpu.memory_space<vmem>>, vector<8x128xbf16>
    %c0_89 = arith.constant 0 : index
    %c0_90 = arith.constant 0 : index
    %c0_91 = arith.constant 0 : index
    %103 = vector.load %arg5[%c0_89, %c0_90, %c0_91] : memref<3x128x256xbf16, #tpu.memory_space<vmem>>, vector<1x128x256xbf16>
    %104 = vector.shape_cast %103 : vector<1x128x256xbf16> to vector<128x256xbf16>
    %cst_92 = arith.constant dense<0.000000e+00> : vector<8x256xf32>
    %105 = tpu.matmul %102, %104, %cst_92 {dimension_numbers = #tpu.dot_dimension_numbers<[1], [0], [0], [1], [0, 0, 1, 1], [], []>} : vector<8x128xbf16>, vector<128x256xbf16>, vector<8x256xf32> -> vector<8x256xf32>
    %106 = arith.addf %101, %105 : vector<8x256xf32>
    %c2_93 = arith.constant 2 : index
    %c0_94 = arith.constant 0 : index
    %107 = vector.load %arg15[%c2_93, %c0_94] : memref<12x128xbf16, #tpu.memory_space<vmem>>, vector<8x128xbf16>
    %c1_95 = arith.constant 1 : index
    %c0_96 = arith.constant 0 : index
    %c0_97 = arith.constant 0 : index
    %108 = vector.load %arg5[%c1_95, %c0_96, %c0_97] : memref<3x128x256xbf16, #tpu.memory_space<vmem>>, vector<1x128x256xbf16>
    %109 = vector.shape_cast %108 : vector<1x128x256xbf16> to vector<128x256xbf16>
    %cst_98 = arith.constant dense<0.000000e+00> : vector<8x256xf32>
    %110 = tpu.matmul %107, %109, %cst_98 {dimension_numbers = #tpu.dot_dimension_numbers<[1], [0], [0], [1], [0, 0, 1, 1], [], []>} : vector<8x128xbf16>, vector<128x256xbf16>, vector<8x256xf32> -> vector<8x256xf32>
    %111 = arith.addf %106, %110 : vector<8x256xf32>
    %c4_99 = arith.constant 4 : index
    %c0_100 = arith.constant 0 : index
    %112 = vector.load %arg15[%c4_99, %c0_100] : memref<12x128xbf16, #tpu.memory_space<vmem>>, vector<8x128xbf16>
    %c2_101 = arith.constant 2 : index
    %c0_102 = arith.constant 0 : index
    %c0_103 = arith.constant 0 : index
    %113 = vector.load %arg5[%c2_101, %c0_102, %c0_103] : memref<3x128x256xbf16, #tpu.memory_space<vmem>>, vector<1x128x256xbf16>
    %114 = vector.shape_cast %113 : vector<1x128x256xbf16> to vector<128x256xbf16>
    %cst_104 = arith.constant dense<0.000000e+00> : vector<8x256xf32>
    %115 = tpu.matmul %112, %114, %cst_104 {dimension_numbers = #tpu.dot_dimension_numbers<[1], [0], [0], [1], [0, 0, 1, 1], [], []>} : vector<8x128xbf16>, vector<128x256xbf16>, vector<8x256xf32> -> vector<8x256xf32>
    %116 = arith.addf %111, %115 : vector<8x256xf32>
    %cst_105 = arith.constant 0.000000e+00 : f32
    %117 = vector.broadcast %cst_105 : f32 to vector<8x256xf32>
    %118 = arith.maximumf %116, %117 : vector<8x256xf32>
    %119 = vector.extract_strided_slice %118 {offsets = [0, 0], sizes = [8, 128], strides = [1, 1]} : vector<8x256xf32> to vector<8x128xf32>
    %120 = vector.extract_strided_slice %118 {offsets = [0, 128], sizes = [8, 128], strides = [1, 1]} : vector<8x256xf32> to vector<8x128xf32>
    %121 = arith.maximumf %119, %120 : vector<8x128xf32>
    %122 = vector.extract_strided_slice %121 {offsets = [0, 0], sizes = [2, 128], strides = [1, 1]} : vector<8x128xf32> to vector<2x128xf32>
    %123 = vector.extract_strided_slice %121 {offsets = [2, 0], sizes = [2, 128], strides = [1, 1]} : vector<8x128xf32> to vector<2x128xf32>
    %124 = arith.maximumf %122, %123 : vector<2x128xf32>
    %125 = arith.truncf %124 : vector<2x128xf32> to vector<2x128xbf16>
    %c2_106 = arith.constant 2 : index
    %c0_107 = arith.constant 0 : index
    %126 = vector.load %arg16[%c2_106, %c0_107] : memref<8x128xbf16, #tpu.memory_space<vmem>>, vector<2x128xbf16>
    tpu.vector_store %arg16[%c2_106, %c0_107], %125 {strides = array<i32>} : memref<8x128xbf16, #tpu.memory_space<vmem>>, vector<2x128xbf16>,
    %127 = vector.extract_strided_slice %121 {offsets = [4, 0], sizes = [2, 128], strides = [1, 1]} : vector<8x128xf32> to vector<2x128xf32>
    %128 = vector.extract_strided_slice %121 {offsets = [6, 0], sizes = [2, 128], strides = [1, 1]} : vector<8x128xf32> to vector<2x128xf32>
    %129 = arith.maximumf %127, %128 : vector<2x128xf32>
    %130 = arith.truncf %129 : vector<2x128xf32> to vector<2x128xbf16>
    %c4_108 = arith.constant 4 : index
    %c0_109 = arith.constant 0 : index
    %131 = vector.load %arg16[%c4_108, %c0_109] : memref<8x128xbf16, #tpu.memory_space<vmem>>, vector<2x128xbf16>
    tpu.vector_store %arg16[%c4_108, %c0_109], %130 {strides = array<i32>} : memref<8x128xbf16, #tpu.memory_space<vmem>>, vector<2x128xbf16>,
    %c0_110 = arith.constant 0 : index
    %c0_111 = arith.constant 0 : index
    %132 = vector.load %arg11[%c0_110, %c0_111] : memref<1x256xf32, #tpu.memory_space<vmem>>, vector<1x256xf32>
    %133 = vector.shape_cast %132 : vector<1x256xf32> to vector<1x256xf32>
    %134 = vector.broadcast %133 : vector<1x256xf32> to vector<4x256xf32>
    %c0_112 = arith.constant 0 : index
    %c0_113 = arith.constant 0 : index
    %135 = vector.load %arg16[%c0_112, %c0_113] : memref<8x128xbf16, #tpu.memory_space<vmem>>, vector<4x128xbf16>
    %c0_114 = arith.constant 0 : index
    %c0_115 = arith.constant 0 : index
    %c0_116 = arith.constant 0 : index
    %136 = vector.load %arg6[%c0_114, %c0_115, %c0_116] : memref<3x128x256xbf16, #tpu.memory_space<vmem>>, vector<1x128x256xbf16>
    %137 = vector.shape_cast %136 : vector<1x128x256xbf16> to vector<128x256xbf16>
    %cst_117 = arith.constant dense<0.000000e+00> : vector<4x256xf32>
    %138 = tpu.matmul %135, %137, %cst_117 {dimension_numbers = #tpu.dot_dimension_numbers<[1], [0], [0], [1], [0, 0, 1, 1], [], []>} : vector<4x128xbf16>, vector<128x256xbf16>, vector<4x256xf32> -> vector<4x256xf32>
    %139 = arith.addf %134, %138 : vector<4x256xf32>
    %c2_118 = arith.constant 2 : index
    %c0_119 = arith.constant 0 : index
    %140 = vector.load %arg16[%c2_118, %c0_119] : memref<8x128xbf16, #tpu.memory_space<vmem>>, vector<4x128xbf16>
    %c1_120 = arith.constant 1 : index
    %c0_121 = arith.constant 0 : index
    %c0_122 = arith.constant 0 : index
    %141 = vector.load %arg6[%c1_120, %c0_121, %c0_122] : memref<3x128x256xbf16, #tpu.memory_space<vmem>>, vector<1x128x256xbf16>
    %142 = vector.shape_cast %141 : vector<1x128x256xbf16> to vector<128x256xbf16>
    %cst_123 = arith.constant dense<0.000000e+00> : vector<4x256xf32>
    %143 = tpu.matmul %140, %142, %cst_123 {dimension_numbers = #tpu.dot_dimension_numbers<[1], [0], [0], [1], [0, 0, 1, 1], [], []>} : vector<4x128xbf16>, vector<128x256xbf16>, vector<4x256xf32> -> vector<4x256xf32>
    %144 = arith.addf %139, %143 : vector<4x256xf32>
    %c4_124 = arith.constant 4 : index
    %c0_125 = arith.constant 0 : index
    %145 = vector.load %arg16[%c4_124, %c0_125] : memref<8x128xbf16, #tpu.memory_space<vmem>>, vector<4x128xbf16>
    %c2_126 = arith.constant 2 : index
    %c0_127 = arith.constant 0 : index
    %c0_128 = arith.constant 0 : index
    %146 = vector.load %arg6[%c2_126, %c0_127, %c0_128] : memref<3x128x256xbf16, #tpu.memory_space<vmem>>, vector<1x128x256xbf16>
    %147 = vector.shape_cast %146 : vector<1x128x256xbf16> to vector<128x256xbf16>
    %cst_129 = arith.constant dense<0.000000e+00> : vector<4x256xf32>
    %148 = tpu.matmul %145, %147, %cst_129 {dimension_numbers = #tpu.dot_dimension_numbers<[1], [0], [0], [1], [0, 0, 1, 1], [], []>} : vector<4x128xbf16>, vector<128x256xbf16>, vector<4x256xf32> -> vector<4x256xf32>
    %149 = arith.addf %144, %148 : vector<4x256xf32>
    %cst_130 = arith.constant 0.000000e+00 : f32
    %150 = vector.broadcast %cst_130 : f32 to vector<4x256xf32>
    %151 = arith.maximumf %149, %150 : vector<4x256xf32>
    %152 = arith.truncf %151 : vector<4x256xf32> to vector<4x256xbf16>
    %c0_131 = arith.constant 0 : index
    %c0_132 = arith.constant 0 : index
    %153 = vector.load %arg7[%c0_131, %c0_132] : memref<256x256xbf16, #tpu.memory_space<vmem>>, vector<256x256xbf16>
    %cst_133 = arith.constant dense<0.000000e+00> : vector<4x256xf32>
    %154 = tpu.matmul %152, %153, %cst_133 {dimension_numbers = #tpu.dot_dimension_numbers<[1], [0], [0], [1], [0, 0, 1, 1], [], []>} : vector<4x256xbf16>, vector<256x256xbf16>, vector<4x256xf32> -> vector<4x256xf32>
    %c0_134 = arith.constant 0 : index
    %c0_135 = arith.constant 0 : index
    %155 = vector.load %arg12[%c0_134, %c0_135] : memref<1x256xf32, #tpu.memory_space<vmem>>, vector<1x256xf32>
    %156 = vector.broadcast %155 : vector<1x256xf32> to vector<4x256xf32>
    %157 = arith.addf %154, %156 : vector<4x256xf32>
    %c0_136 = arith.constant 0 : index
    %c0_137 = arith.constant 0 : index
    %c0_138 = arith.constant 0 : index
    %158 = vector.load %arg13[%c0_136, %c0_137, %c0_138] : memref<1x4x256xf32, #tpu.memory_space<vmem>>, vector<1x4x256xf32>
    %159 = vector.shape_cast %158 : vector<1x4x256xf32> to vector<4x256xf32>
    %160 = vector.shape_cast %157 : vector<4x256xf32> to vector<1x4x256xf32>
    tpu.vector_store %arg13[%c0_136, %c0_137, %c0_138], %160 {strides = array<i32>} : memref<1x4x256xf32, #tpu.memory_space<vmem>>, vector<1x4x256xf32>,
    return
  }
  func.func @transform_0(%arg0: i32) -> (i32, i32, i32) {
    %c0_i32 = arith.constant 0 : i32
    %c0_i32_0 = arith.constant 0 : i32
    %c0_i32_1 = arith.constant 0 : i32
    return %arg0, %c0_i32, %c0_i32_0 : i32, i32, i32
  }
  func.func @transform_1(%arg0: i32) -> (i32, i32, i32) {
    %c0_i32 = arith.constant 0 : i32
    %c0_i32_0 = arith.constant 0 : i32
    %c0_i32_1 = arith.constant 0 : i32
    return %arg0, %c0_i32, %c0_i32_0 : i32, i32, i32
  }
  func.func @transform_2(%arg0: i32) -> (i32, i32, i32) {
    %c0_i32 = arith.constant 0 : i32
    %c0_i32_0 = arith.constant 0 : i32
    %c0_i32_1 = arith.constant 0 : i32
    %c0_i32_2 = arith.constant 0 : i32
    return %c0_i32, %c0_i32_0, %c0_i32_1 : i32, i32, i32
  }
  func.func @transform_3(%arg0: i32) -> (i32, i32, i32) {
    %c0_i32 = arith.constant 0 : i32
    %c0_i32_0 = arith.constant 0 : i32
    %c0_i32_1 = arith.constant 0 : i32
    %c0_i32_2 = arith.constant 0 : i32
    return %c0_i32, %c0_i32_0, %c0_i32_1 : i32, i32, i32
  }
  func.func @transform_4(%arg0: i32) -> (i32, i32, i32) {
    %c0_i32 = arith.constant 0 : i32
    %c0_i32_0 = arith.constant 0 : i32
    %c0_i32_1 = arith.constant 0 : i32
    %c0_i32_2 = arith.constant 0 : i32
    return %c0_i32, %c0_i32_0, %c0_i32_1 : i32, i32, i32
  }
  func.func @transform_5(%arg0: i32) -> (i32, i32, i32) {
    %c0_i32 = arith.constant 0 : i32
    %c0_i32_0 = arith.constant 0 : i32
    %c0_i32_1 = arith.constant 0 : i32
    %c0_i32_2 = arith.constant 0 : i32
    return %c0_i32, %c0_i32_0, %c0_i32_1 : i32, i32, i32
  }
  func.func @transform_6(%arg0: i32) -> (i32, i32) {
    %c0_i32 = arith.constant 0 : i32
    %c0_i32_0 = arith.constant 0 : i32
    %c0_i32_1 = arith.constant 0 : i32
    return %c0_i32, %c0_i32_0 : i32, i32
  }
  func.func @transform_7(%arg0: i32) -> (i32, i32) {
    %c0_i32 = arith.constant 0 : i32
    %c0_i32_0 = arith.constant 0 : i32
    %c0_i32_1 = arith.constant 0 : i32
    return %c0_i32, %c0_i32_0 : i32, i32
  }
  func.func @transform_8(%arg0: i32) -> (i32, i32) {
    %c0_i32 = arith.constant 0 : i32
    %c0_i32_0 = arith.constant 0 : i32
    %c0_i32_1 = arith.constant 0 : i32
    return %c0_i32, %c0_i32_0 : i32, i32
  }
  func.func @transform_9(%arg0: i32) -> (i32, i32) {
    %c0_i32 = arith.constant 0 : i32
    %c0_i32_0 = arith.constant 0 : i32
    %c0_i32_1 = arith.constant 0 : i32
    return %c0_i32, %c0_i32_0 : i32, i32
  }
  func.func @transform_10(%arg0: i32) -> (i32, i32) {
    %c0_i32 = arith.constant 0 : i32
    %c0_i32_0 = arith.constant 0 : i32
    %c0_i32_1 = arith.constant 0 : i32
    return %c0_i32, %c0_i32_0 : i32, i32
  }
  func.func @transform_11(%arg0: i32) -> (i32, i32) {
    %c0_i32 = arith.constant 0 : i32
    %c0_i32_0 = arith.constant 0 : i32
    %c0_i32_1 = arith.constant 0 : i32
    return %c0_i32, %c0_i32_0 : i32, i32
  }
  func.func @transform_12(%arg0: i32) -> (i32, i32, i32) {
    %c0_i32 = arith.constant 0 : i32
    %c0_i32_0 = arith.constant 0 : i32
    %c0_i32_1 = arith.constant 0 : i32
    return %arg0, %c0_i32, %c0_i32_0 : i32, i32, i32
  }
}

</mosaic_0001>

<bundles_post_ra>
// kernel: encoder_forward.1
= control target key start
LH: loop header
LB: loop body
LE: loop exit
PB: predicated region body
PF: predicated region fallthrough
CT: control target
= control target key end

     0   :  { %17 = vsyncpa [#allocation6], 0  ;;  %s4211_s0 = inlined_call_operand.vmem [shape: bf16[1,22,128], index: 0, kind: input, shape index: {}]   ;;  %s4212_s1 = inlined_call_operand.vmem [shape: bf16[1,22,128], index: 1, kind: input, shape index: {}]   ;;  %s4213_s2 = inlined_call_operand.vmem [shape: bf16[7,128,128], index: 2, kind: input, shape index: {}]   ;;  %s4214_s3 = inlined_call_operand.vmem [shape: bf16[3,128,256], index: 3, kind: input, shape index: {}]   ;;  %s4215_s4 = inlined_call_operand.hbm [shape: bf16[3,128,256], index: 4, kind: input, shape index: {}]   ;;  %s4216_s5 = inlined_call_operand.hbm [shape: bf16[3,128,256], index: 5, kind: input, shape index: {}]   ;;  %s4217_s6 = inlined_call_operand.hbm [shape: bf16[256,256], index: 6, kind: input, shape index: {}]   ;;  %s4218_s7 = inlined_call_operand.vmem [shape: f32[1,128], index: 7, kind: input, shape index: {}]   ;;  %s4219_s8 = inlined_call_operand.vmem [shape: f32[1,256], index: 8, kind: input, shape index: {}]   ;;  %s4220_s9 = inlined_call_operand.vmem [shape: f32[1,256], index: 9, kind: input, shape index: {}]   ;;  %s4221_s10 = inlined_call_operand.vmem [shape: f32[1,256], index: 10, kind: input, shape index: {}]   ;;  %s4222_s11 = inlined_call_operand.vmem [shape: f32[1,256], index: 11, kind: input, shape index: {}]   ;;  %s4223_s12 = inlined_call_operand.vmem [shape: f32[1,4,256], index: 12, kind: output, shape index: {}]  }
   0x1   :  { %18 = vsyncpa [#allocation8], 0  ;;  %s3647_s21 = smov [#allocation7]   ;;  %s3648_s23 = smov [#allocation5]  }
   0x2   :  { %s44_s22 = sshll.u32 %s3647_s21, 4  ;;  %s32_s24 = sshll.u32 %s3648_s23, 4  ;;  %s45_s22 = int_to_ptr.vmem [resolvable:$true] %s44_s22  ;;  %s33_s24 = int_to_ptr.vmem [resolvable:$true] %s32_s24 }
   0x3   :  { %s3591_s25 = scalar_lea.vmem %s45_s22, 6144  ;;  %p3596_p1 = scmp.lt.s32.totalorder %s45_s22, %s45_s22 }
   0x4   :  { %p3592_p0 = scmp.ne.s32.totalorder %s45_s22, %s3591_s25  ;;  %p3597_p2 = scmp.lt.s32.totalorder %s3591_s25, %s3591_s25 }
   0x6   :  { %p3598_p3 = por %p3597_p2, %p3596_p1 }
   0x8   :  { %p3599_p4 = pnand %p3598_p3, %p3592_p0 }
   0xa   :  { %3602 = shalt.err (!%p3599_p4)
}
   0xb   :  { %s3649_s26 = smov 128   ;;  %s3650_s27 = smov 8  }
   0xc   :  { %50 = dma.hbm_to_vmem [thread:$0]  %s4216_s5, 6144, %s45_s22, [#allocation8], %s3649_s26, %s3649_s26, %s3650_s27  }
   0xd   :  { %s3611_s30 = scalar_lea.vmem %s33_s24, 6144  ;;  %p3616_p6 = scmp.lt.s32.totalorder %s33_s24, %s33_s24 }
   0xe   :  { %p3612_p5 = scmp.ne.s32.totalorder %s33_s24, %s3611_s30  ;;  %p3617_p7 = scmp.lt.s32.totalorder %s3611_s30, %s3611_s30 }
  0x10   :  { %p3618_p8 = por %p3617_p7, %p3616_p6 }
  0x12   :  { %p3619_p9 = pnand %p3618_p8, %p3612_p5 }
  0x14   :  { %3622 = shalt.err (!%p3619_p9)
}
  0x15   :  { %38 = dma.hbm_to_vmem [thread:$0]  %s4215_s4, 6144, %s33_s24, [#allocation6], %s3649_s26, %s3649_s26, %s3650_s27  }
  0x16   :  { %s3651_s15 = smov [#allocation9]  }
  0x17   :  { %s56_s16 = sshll.u32 %s3651_s15, 4  ;;  %s57_s16 = int_to_ptr.vmem [resolvable:$true] %s56_s16 }
  0x18   :  { %s3631_s17 = scalar_lea.vmem %s57_s16, 4096  ;;  %p3636_p11 = scmp.lt.s32.totalorder %s57_s16, %s57_s16 }
  0x19   :  { %p3632_p10 = scmp.ne.s32.totalorder %s57_s16, %s3631_s17  ;;  %p3637_p12 = scmp.lt.s32.totalorder %s3631_s17, %s3631_s17 }
  0x1b   :  { %p3638_p13 = por %p3637_p12, %p3636_p11 }
  0x1d   :  { %p3639_p0 = pnand %p3638_p13, %p3632_p10 }
  0x1f   :  { %3642 = shalt.err (!%p3639_p0)
}
  0x20   :  { %62 = dma.hbm_to_vmem [thread:$0]  %s4217_s6, 4096, %s57_s16, [#allocation8], %s3649_s26, %s3649_s26, %s3650_s27  }
  0x21   :  { %3643 = dma.done.wait [#allocation6], 6144  }
  0x22   :  { %3644 = vsyncadd [#allocation6], 4294961152 }
  0x23   :  { %3645 = dma.done.wait [#allocation8], 10240  }
  0x24   :  { %3646 = vsyncadd [#allocation8], 4294957056  ;;  %v3652_v0 = vmov 0.0   ;;  %vm3653_vm0 = vmmov 0   ;;  %v3242_v1 = vld [vmem:[%s4213_s2 + $0x38] sm:$0xff]   ;;  %v3243_v2 = vld [vmem:[%s4213_s2 + $0x30] sm:$0xff]  }
  0x25   :  { %3094 = vmatprep.subr.bf16.mxu1 %v3652_v0  ;;  %3134 = vmatprep.subr.bf16.mxu0 %v3652_v0  ;;  %v3244_v3 = vld [vmem:[%s4213_s2 + $0x28] sm:$0xff]   ;;  %v3250_v4 = vld [vmem:[%s4213_s2 + $0xb8] sm:$0xff]   ;;  %v3245_v5 = vld [vmem:[%s4213_s2 + $0x20] sm:$0xff]   ;;  %vm355_vm1 = vcmask 1046528   ;;  %vm599_vm2 = vcmask 1045504   ;;  %vm840_vm3 = vcmask 1044480  }
  0x26   :  { %3110 = vmatprep.mubr.msk.bf16.mxu1 %vm3653_vm0, %v3652_v0  ;;  %3150 = vmatprep.mubr.msk.bf16.mxu0 %vm3653_vm0, %v3652_v0  ;;  %v3253_v6 = vld [vmem:[%s4213_s2 + $0xb0] sm:$0xff]   ;;  %v3246_v7 = vld [vmem:[%s4213_s2 + $0x18] sm:$0xff]   ;;  %v3255_v8 = vld [vmem:[%s4213_s2 + $0xa8] sm:$0xff]   ;;  %vm944_vm4 = vcmask 1040384   ;;  %vm945_vm5 = vcmask 1044484  }
  0x27   :  { %3095 = vmatpush3.bf16.msra.mxu1 %v3242_v1  ;;  %3135 = vmatpush3.bf16.msra.mxu0 %v3250_v4  ;;  %v3247_v9 = vld [vmem:[%s4213_s2 + $0x10] sm:$0xff]   ;;  %v3257_v10 = vld [vmem:[%s4213_s2 + $0xa0] sm:$0xff]   ;;  %v3248_v11 = vld [vmem:[%s4213_s2 + $0x8] sm:$0xff]  }
  0x28   :  { %3096 = vmatprep.subr.bf16.mxu1 %v3652_v0  ;;  %3136 = vmatprep.subr.bf16.mxu0 %v3652_v0  ;;  %v3259_v12 = vld [vmem:[%s4213_s2 + $0x98] sm:$0xff]   ;;  %v3249_v13 = vld [vmem:[%s4213_s2] sm:$0xff]   ;;  %v3261_v14 = vld [vmem:[%s4213_s2 + $0x90] sm:$0xff]  }
  0x29   :  { %v327_v15 = vld [vmem:[%s4211_s0] sm:$0xe]  ;;  %v3793_v16 = vld [vmem:[%s4211_s0 + $0x4] sm:$0xf]  ;;  %v3252_v18 = vld [vmem:[%s4213_s2 + $0x78] sm:$0xff]  }
  0x2a   :  { %v3251_v17 = vld [vmem:[%s4211_s0] sm:$0xff]   ;;  %v3268_v19 = vld [vmem:[%s4211_s0 + $0x8] ss:$0 sps:$4 sm:$0x11]   ;;  %v2689_v21 = vcombine.low %v327_v15, %v3793_v16  ;;  %v3254_v22 = vld [vmem:[%s4213_s2 + $0x70] sm:$0xff]  }
  0x2b   :  { %3097 = vmatpush3.bf16.msra.mxu1 %v3243_v2  ;;  %3137 = vmatpush3.bf16.msra.mxu0 %v3253_v6  ;;  %v3263_v20 = vld [vmem:[%s4213_s2 + $0x88] sm:$0xff]   ;;  %v3265_v23 = vld [vmem:[%s4213_s2 + $0x80] sm:$0xff]   ;;  %v357_v25 = vrot.slane %v3268_v19, 1  ;;  %v3269_v28 = vld [vmem:[%s4213_s2 + $0x138] sm:$0xff]  }
  0x2c   :  { %3098 = vmatprep.subr.bf16.mxu1 %v3652_v0  ;;  %3138 = vmatprep.subr.bf16.mxu0 %v3652_v0  ;;  %v356_v24 = vrot.slane %v2689_v21, 1  ;;  %v3256_v26 = vld [vmem:[%s4213_s2 + $0x68] sm:$0xff]   ;;  %v3258_v29 = vld [vmem:[%s4213_s2 + $0x60] sm:$0xff]   ;;  %v3272_v30 = vld [vmem:[%s4213_s2 + $0x130] sm:$0xff]  }
  0x2d   :  { %v3260_v31 = vld [vmem:[%s4213_s2 + $0x58] sm:$0xff]   ;;  %v3274_v32 = vld [vmem:[%s4213_s2 + $0x128] sm:$0xff]   ;;  %v3262_v33 = vld [vmem:[%s4213_s2 + $0x50] sm:$0xff]  }
  0x2e   :  { %v358_v27 = vsel %vm355_vm1, %v356_v24, %v357_v25  ;;  %v3276_v34 = vld [vmem:[%s4213_s2 + $0x120] sm:$0xff]   ;;  %v3264_v35 = vld [vmem:[%s4213_s2 + $0x48] sm:$0xff]   ;;  %v3278_v36 = vld [vmem:[%s4213_s2 + $0x118] sm:$0xff]  }
  0x2f   :  { %3099 = vmatpush3.bf16.msra.mxu1 %v3244_v3  ;;  %3139 = vmatpush3.bf16.msra.mxu0 %v3255_v8  ;;  %v3266_v37 = vld [vmem:[%s4213_s2 + $0x40] sm:$0xff]   ;;  %v3280_v38 = vld [vmem:[%s4213_s2 + $0x110] sm:$0xff]   ;;  %v3271_v41 = vld [vmem:[%s4213_s2 + $0xf8] sm:$0xff]  }
  0x30   :  { %3100 = vmatprep.subr.bf16.mxu1 %v3652_v0  ;;  %3140 = vmatprep.subr.bf16.mxu0 %v3652_v0  ;;  %v574_v39 = vld [vmem:[%s4211_s0] sm:$0xc]  ;;  %v3282_v42 = vld [vmem:[%s4213_s2 + $0x108] sm:$0xff]   ;;  %v3273_v45 = vld [vmem:[%s4213_s2 + $0xf0] sm:$0xff]  }
  0x31   :  { %v3270_v40 = vld [vmem:[%s4212_s1] sm:$0xff]   ;;  %v2741_v43 = vcombine.low %v574_v39, %v3793_v16  ;;  %v3287_v44 = vld [vmem:[%s4211_s0 + $0x8] ss:$0 sps:$4 sm:$0x33]   ;;  %v3288_v50 = vld [vmem:[%s4213_s2 + $0x1b8] sm:$0xff]  }
  0x32   :  { %v3284_v46 = vld [vmem:[%s4213_s2 + $0x100] sm:$0xff]   ;;  %v601_v48 = vrot.slane %v3287_v44, 2  ;;  %v3275_v49 = vld [vmem:[%s4213_s2 + $0xe8] sm:$0xff]   ;;  %v3292_v53 = vld [vmem:[%s4213_s2 + $0x1b0] sm:$0xff]  }
  0x33   :  { %3101 = vmatpush3.bf16.msra.mxu1 %v3245_v5  ;;  %3141 = vmatpush3.bf16.msra.mxu0 %v3257_v10  ;;  %v600_v47 = vrot.slane %v2741_v43, 2  ;;  %v3277_v52 = vld [vmem:[%s4213_s2 + $0xe0] sm:$0xff]   ;;  %v3279_v54 = vld [vmem:[%s4213_s2 + $0xd8] sm:$0xff]   ;;  %v3294_v55 = vld [vmem:[%s4213_s2 + $0x1a8] sm:$0xff]  }
  0x34   :  { %3102 = vmatprep.subr.bf16.mxu1 %v3652_v0  ;;  %3142 = vmatprep.subr.bf16.mxu0 %v3652_v0  ;;  %v3281_v56 = vld [vmem:[%s4213_s2 + $0xd0] sm:$0xff]   ;;  %v3296_v57 = vld [vmem:[%s4213_s2 + $0x1a0] sm:$0xff]   ;;  %v3283_v60 = vld [vmem:[%s4213_s2 + $0xc8] sm:$0xff]  }
  0x35   :  { %v602_v51 = vsel %vm599_vm2, %v600_v47, %v601_v48  ;;  %v451_v58 = vld [vmem:[%s4212_s1] sm:$0xe]  ;;  %v3940_v59 = vld [vmem:[%s4212_s1 + $0x4] sm:$0xf]  ;;  %v3298_v62 = vld [vmem:[%s4213_s2 + $0x198] sm:$0xff]   ;;  %v3654_v48 = vmov 0  }
  0x36   :  { %v3290_v61 = vld [vmem:[%s4212_s1 + $0x8] ss:$0 sps:$4 sm:$0x11]   ;;  %v2715_v63 = vcombine.low %v451_v58, %v3940_v59  ;;  %v3285_v1 = vld [vmem:[%s4213_s2 + $0xc0] sm:$0xff]   ;;  %v3300_v2 = vld [vmem:[%s4213_s2 + $0x190] sm:$0xff]  }
  0x37   :  { %3103 = vmatpush3.bf16.msra.mxu1 %v3246_v7  ;;  %3143 = vmatpush3.bf16.msra.mxu0 %v3259_v12  ;;  %v815_v3 = vld [vmem:[%s4211_s0] sm:$0x8]  ;;  %v480_v5 = vrot.slane %v3290_v61, 1  ;;  %v3291_v6 = vld [vmem:[%s4213_s2 + $0x178] sm:$0xff]   ;;  %v3302_v7 = vld [vmem:[%s4213_s2 + $0x188] sm:$0xff]  }
  0x38   :  { %3104 = vmatprep.subr.bf16.mxu1 %v3652_v0  ;;  %3144 = vmatprep.subr.bf16.mxu0 %v3652_v0  ;;  %v479_v4 = vrot.slane %v2715_v63, 1  ;;  %v3306_v8 = vld [vmem:[%s4211_s0 + $0x8] ss:$0 sps:$4 sm:$0x77]   ;;  %v2793_v10 = vcombine.low %v815_v3, %v3793_v16  ;;  %v3304_v12 = vld [vmem:[%s4213_s2 + $0x180] sm:$0xff]   ;;  %v3301_v19 = vld [vmem:[%s4213_s2 + $0x150] sm:$0xff]  }
  0x39   :  { %v3295_v15 = vld [vmem:[%s4213_s2 + $0x168] sm:$0xff]   ;;  %v3307_v24 = vld [vmem:[%s4213_s2 + $0x140] sm:$0xff]   ;;  %v3330_v39 = vld [vmem:[%s4214_s3 + $0xd4] ss:$8 sps:$4 sm:$0xff]   ;;  %83 = vst [vmem:[#allocation2] sm:$0x1] %v3654_v48 }
  0x3a   :  { %v3303_v21 = vld [vmem:[%s4213_s2 + $0x148] sm:$0xff]   ;;  %v3342_v47 = vld [vmem:[%s4214_s3 + $0xb4] ss:$8 sps:$4 sm:$0xff]   ;;  %85 = vst [vmem:[#allocation3] sm:$0x1] %v3654_v48  ;;  %vm946_vm6 = vmor %vm944_vm4, %vm945_vm5 }
  0x3b   :  { %3105 = vmatpush3.bf16.msra.mxu1 %v3247_v9  ;;  %3145 = vmatpush3.bf16.msra.mxu0 %v3261_v14  ;;  %v481_v9 = vsel %vm355_vm1, %v479_v4, %v480_v5  ;;  %v842_v14 = vrot.slane %v3306_v8, 3  ;;  %v3336_v43 = vld [vmem:[%s4214_s3 + $0xc4] ss:$8 sps:$4 sm:$0xff]   ;;  %v3334_v44 = vld [vmem:[%s4214_s3 + $0xc0] ss:$8 sps:$4 sm:$0xff]  }
  0x3c   :  { %3106 = vmatprep.subr.bf16.mxu1 %v3652_v0  ;;  %3146 = vmatprep.subr.bf16.mxu0 %v3652_v0  ;;  %86 = vst [vmem:[#allocation3 + $0x4] sm:$0x2] %v3654_v48  ;;  %87 = vst [vmem:[#allocation4] sm:$0x1] %v3654_v48  ;;  %v3357_v58 = vld [vmem:[%s4214_s3 + $0x174] ss:$8 sps:$4 sm:$0xff]  }
  0x3f   :  { %3107 = vmatpush3.bf16.msra.mxu1 %v3248_v11  ;;  %3147 = vmatpush3.bf16.msra.mxu0 %v3263_v20  ;;  %v3293_v11 = vld [vmem:[%s4213_s2 + $0x170] sm:$0xff]   ;;  %v695_v20 = vld [vmem:[%s4212_s1] sm:$0xc] }
  0x40   :  { %3108 = vmatprep.subr.bf16.mxu1 %v3652_v0  ;;  %3148 = vmatprep.subr.bf16.mxu0 %v3652_v0 }
  0x43   :  { %3109 = vmatpush3.bf16.msra.mxu1 %v3249_v13  ;;  %3149 = vmatpush3.bf16.msra.mxu0 %v3265_v23  ;;  %v841_v13 = vrot.slane %v2793_v10, 3  ;;  %v2767_v23 = vcombine.low %v695_v20, %v3940_v59  ;;  %v3361_v59 = vld [vmem:[%s4214_s3 + $0x84] ss:$8 sps:$4 sm:$0xff]  }
  0x44   :  { %3114 = vmatprep.subr.bf16.mxu1 %v3652_v0  ;;  %3174 = vmatprep.subr.bf16.mxu0 %v3652_v0 }
  0x45   :  { %v843_v16 = vsel %vm840_vm3, %v841_v13, %v842_v14  ;;  %v720_v25 = vrot.slane %v2767_v23, 2 }
  0x46   :  { %3111 = vmatmul.mubr.bf16.vlgmr.msra.gmra.mxu1 %v3251_v17  ;;  %3151 = vmatmul.mubr.bf16.vlgmr.msra.gmra.mxu0 %v358_v27  ;;  %v3297_v17 = vld [vmem:[%s4213_s2 + $0x160] sm:$0xff]  }
  0x47   :  { %3115 = vmatpush3.bf16.msra.mxu1 %v3252_v18  ;;  %3130 = vmatprep.mubr.msk.bf16.mxu1 %vm3653_vm0, %v3652_v0  ;;  %v3299_v18 = vld [vmem:[%s4213_s2 + $0x158] sm:$0xff]  }
  0x48   :  { %3116 = vmatprep.subr.bf16.mxu1 %v3652_v0  ;;  %3175 = vmatpush3.bf16.msra.mxu0 %v3269_v28  ;;  %v3310_v28 = vld [vmem:[%s4214_s3 + $0x70] ss:$8 sps:$4 sm:$0xff]  }
  0x49   :  { %3176 = vmatprep.subr.bf16.mxu0 %v3652_v0  ;;  %3190 = vmatprep.mubr.msk.bf16.mxu0 %vm3653_vm0, %v3652_v0 }
  0x4b   :  { %3117 = vmatpush3.bf16.msra.mxu1 %v3254_v22  ;;  %v3309_v22 = vld [vmem:[%s4212_s1 + $0x8] ss:$0 sps:$4 sm:$0x33]  }
  0x4c   :  { %3118 = vmatprep.subr.bf16.mxu1 %v3652_v0  ;;  %3177 = vmatpush3.bf16.msra.mxu0 %v3272_v30  ;;  %v3315_v30 = vld [vmem:[%s4214_s3 + $0x64] ss:$8 sps:$4 sm:$0xff]  }
  0x4d   :  { %3178 = vmatprep.subr.bf16.mxu0 %v3652_v0 }
  0x4f   :  { %3119 = vmatpush3.bf16.msra.mxu1 %v3256_v26  ;;  %v721_v26 = vrot.slane %v3309_v22, 2 }
  0x50   :  { %3120 = vmatprep.subr.bf16.mxu1 %v3652_v0  ;;  %3179 = vmatpush3.bf16.msra.mxu0 %v3274_v32  ;;  %v3318_v32 = vld [vmem:[%s4214_s3 + $0xf4] ss:$8 sps:$4 sm:$0xff]  }
  0x51   :  { %3180 = vmatprep.subr.bf16.mxu0 %v3652_v0  ;;  %v722_v27 = vsel %vm599_vm2, %v720_v25, %v721_v26 }
  0x53   :  { %3121 = vmatpush3.bf16.msra.mxu1 %v3258_v29  ;;  %v3312_v29 = vld [vmem:[%s4214_s3 + $0x74] ss:$8 sps:$4 sm:$0xff]  }
  0x54   :  { %3122 = vmatprep.subr.bf16.mxu1 %v3652_v0  ;;  %3181 = vmatpush3.bf16.msra.mxu0 %v3276_v34  ;;  %v3319_v34 = vld [vmem:[%s4214_s3 + $0x50] ss:$8 sps:$4 sm:$0xff]  }
  0x55   :  { %3182 = vmatprep.subr.bf16.mxu0 %v3652_v0 }
  0x57   :  { %3123 = vmatpush3.bf16.msra.mxu1 %v3260_v31  ;;  %v3316_v31 = vld [vmem:[%s4214_s3 + $0xf0] ss:$8 sps:$4 sm:$0xff]  }
  0x58   :  { %3124 = vmatprep.subr.bf16.mxu1 %v3652_v0  ;;  %3183 = vmatpush3.bf16.msra.mxu0 %v3278_v36  ;;  %v3322_v36 = vld [vmem:[%s4214_s3 + $0xe0] ss:$8 sps:$4 sm:$0xff]  }
  0x59   :  { %3184 = vmatprep.subr.bf16.mxu0 %v3652_v0 }
  0x5b   :  { %3125 = vmatpush3.bf16.msra.mxu1 %v3262_v33  ;;  %v3321_v33 = vld [vmem:[%s4214_s3 + $0x54] ss:$8 sps:$4 sm:$0xff]  }
  0x5c   :  { %3126 = vmatprep.subr.bf16.mxu1 %v3652_v0  ;;  %3185 = vmatpush3.bf16.msra.mxu0 %v3280_v38  ;;  %v3325_v38 = vld [vmem:[%s4214_s3 + $0x40] ss:$8 sps:$4 sm:$0xff]  }
  0x5d   :  { %3186 = vmatprep.subr.bf16.mxu0 %v3652_v0 }
  0x5f   :  { %3127 = vmatpush3.bf16.msra.mxu1 %v3264_v35  ;;  %v3324_v35 = vld [vmem:[%s4214_s3 + $0xe4] ss:$8 sps:$4 sm:$0xff]  }
  0x60   :  { %3128 = vmatprep.subr.bf16.mxu1 %v3652_v0  ;;  %3187 = vmatpush3.bf16.msra.mxu0 %v3282_v42  ;;  %v3331_v42 = vld [vmem:[%s4214_s3 + $0x30] ss:$8 sps:$4 sm:$0xff]  }
  0x61   :  { %3188 = vmatprep.subr.bf16.mxu0 %v3652_v0 }
  0x63   :  { %3129 = vmatpush3.bf16.msra.mxu1 %v3266_v37  ;;  %v3327_v37 = vld [vmem:[%s4214_s3 + $0x44] ss:$8 sps:$4 sm:$0xff]  }
  0x64   :  { %3154 = vmatprep.subr.bf16.mxu1 %v3652_v0  ;;  %3189 = vmatpush3.bf16.msra.mxu0 %v3284_v46  ;;  %v3337_v46 = vld [vmem:[%s4214_s3 + $0x20] ss:$8 sps:$4 sm:$0xff]  }
  0x65   :  { %3214 = vmatprep.subr.bf16.mxu0 %v3652_v0 }
  0x66   :  { %3131 = vmatmul.mubr.bf16.vlgmr.msra.gmra.mxu1 %v3270_v40  ;;  %v3328_v40 = vld [vmem:[%s4214_s3 + $0xd0] ss:$8 sps:$4 sm:$0xff]  }
  0x67   :  { %3155 = vmatpush3.bf16.msra.mxu1 %v3271_v41  ;;  %3170 = vmatprep.mubr.msk.bf16.mxu1 %vm3653_vm0, %v3652_v0  ;;  %v3333_v41 = vld [vmem:[%s4214_s3 + $0x34] ss:$8 sps:$4 sm:$0xff]  }
  0x68   :  { %3156 = vmatprep.subr.bf16.mxu1 %v3652_v0  ;;  %3191 = vmatmul.mubr.bf16.vlgmr.msra.gmra.mxu0 %v602_v51  ;;  %v3343_v51 = vld [vmem:[%s4214_s3 + $0x10] ss:$8 sps:$4 sm:$0xff]  }
  0x69   :  { %3215 = vmatpush3.bf16.msra.mxu0 %v3288_v50  ;;  %3230 = vmatprep.mubr.msk.bf16.mxu0 %vm3653_vm0, %v3652_v0  ;;  %v3345_v50 = vld [vmem:[%s4214_s3 + $0x14] ss:$8 sps:$4 sm:$0xff]  }
  0x6a   :  { %3216 = vmatprep.subr.bf16.mxu0 %v3652_v0 }
  0x6b   :  { %3157 = vmatpush3.bf16.msra.mxu1 %v3273_v45  ;;  %v3339_v45 = vld [vmem:[%s4214_s3 + $0x24] ss:$8 sps:$4 sm:$0xff]  }
  0x6c   :  { %3158 = vmatprep.subr.bf16.mxu1 %v3652_v0 }
  0x6d   :  { %3217 = vmatpush3.bf16.msra.mxu0 %v3292_v53  ;;  %v3346_v53 = vld [vmem:[%s4214_s3 + $0xa0] ss:$8 sps:$4 sm:$0xff]  }
  0x6e   :  { %3218 = vmatprep.subr.bf16.mxu0 %v3652_v0 }
  0x6f   :  { %3159 = vmatpush3.bf16.msra.mxu1 %v3275_v49  ;;  %v3340_v49 = vld [vmem:[%s4214_s3 + $0xb0] ss:$8 sps:$4 sm:$0xff]  }
  0x70   :  { %3160 = vmatprep.subr.bf16.mxu1 %v3652_v0 }
  0x71   :  { %3219 = vmatpush3.bf16.msra.mxu0 %v3294_v55  ;;  %v3351_v55 = vld [vmem:[%s4214_s3 + $0x4] ss:$8 sps:$4 sm:$0xff]  }
  0x72   :  { %3220 = vmatprep.subr.bf16.mxu0 %v3652_v0 }
  0x73   :  { %3161 = vmatpush3.bf16.msra.mxu1 %v3277_v52  ;;  %v3348_v52 = vld [vmem:[%s4214_s3 + $0xa4] ss:$8 sps:$4 sm:$0xff]  }
  0x74   :  { %3162 = vmatprep.subr.bf16.mxu1 %v3652_v0 }
  0x75   :  { %3221 = vmatpush3.bf16.msra.mxu0 %v3296_v57  ;;  %v3354_v57 = vld [vmem:[%s4214_s3 + $0x94] ss:$8 sps:$4 sm:$0xff]  }
  0x76   :  { %3222 = vmatprep.subr.bf16.mxu0 %v3652_v0 }
  0x77   :  { %3163 = vmatpush3.bf16.msra.mxu1 %v3279_v54  ;;  %v3349_v54 = vld [vmem:[%s4214_s3] ss:$8 sps:$4 sm:$0xff]  }
  0x78   :  { %3164 = vmatprep.subr.bf16.mxu1 %v3652_v0 }
  0x79   :  { %3223 = vmatpush3.bf16.msra.mxu0 %v3298_v62 }
  0x7a   :  { %3224 = vmatprep.subr.bf16.mxu0 %v3652_v0 }
  0x7b   :  { %3165 = vmatpush3.bf16.msra.mxu1 %v3281_v56  ;;  %v3352_v56 = vld [vmem:[%s4214_s3 + $0x90] ss:$8 sps:$4 sm:$0xff]  }
  0x7c   :  { %3166 = vmatprep.subr.bf16.mxu1 %v3652_v0 }
  0x7d   :  { %3225 = vmatpush3.bf16.msra.mxu0 %v3300_v2 }
  0x7e   :  { %3226 = vmatprep.subr.bf16.mxu0 %v3652_v0 }
  0x7f   :  { %3167 = vmatpush3.bf16.msra.mxu1 %v3283_v60  ;;  %v3359_v60 = vld [vmem:[%s4214_s3 + $0x80] ss:$8 sps:$4 sm:$0xff]  }
  0x80   :  { %3168 = vmatprep.subr.bf16.mxu1 %v3652_v0 }
  0x81   :  { %3227 = vmatpush3.bf16.msra.mxu0 %v3302_v7 }
  0x82   :  { %3228 = vmatprep.subr.bf16.mxu0 %v3652_v0 }
  0x83   :  { %3169 = vmatpush3.bf16.msra.mxu1 %v3285_v1 }
  0x84   :  { %3194 = vmatprep.subr.bf16.mxu1 %v3652_v0 }
  0x85   :  { %3229 = vmatpush3.bf16.msra.mxu0 %v3304_v12 }
  0x86   :  { %3171 = vmatmul.mubr.bf16.vlgmr.msra.gmra.mxu1 %v481_v9  ;;  %1233 = vmatprep.subr.bf16.mxu0 %v3318_v32 }
  0x87   :  { %3195 = vmatpush3.bf16.msra.mxu1 %v3291_v6  ;;  %3210 = vmatprep.mubr.msk.bf16.mxu1 %vm3653_vm0, %v3652_v0  ;;  %v2638_v6 = vld [vmem:[%s4218_s7] ss:$0 sm:$0xff] }
  0x88   :  { %3196 = vmatprep.subr.bf16.mxu1 %v3652_v0  ;;  %3231 = vmatmul.mubr.bf16.vlgmr.msra.gmra.mxu0 %v843_v16 }
  0x89   :  { %1234 = vmatpush1.bf16.msra.mxu0 %v3316_v31  ;;  %1265 = vmatprep.mubr.bf16.mxu0 %v3654_v48 }
  0x8a   :  { %1235 = vmatprep.subr.bf16.mxu0 %v3324_v35 }
  0x8b   :  { %3197 = vmatpush3.bf16.msra.mxu1 %v3293_v11 }
  0x8c   :  { %3198 = vmatprep.subr.bf16.mxu1 %v3652_v0 }
  0x8d   :  { %1236 = vmatpush1.bf16.msra.mxu0 %v3322_v36 }
  0x8e   :  { %1237 = vmatprep.subr.bf16.mxu0 %v3330_v39 }
  0x8f   :  { %3199 = vmatpush3.bf16.msra.mxu1 %v3295_v15 }
  0x90   :  { %3200 = vmatprep.subr.bf16.mxu1 %v3652_v0 }
  0x91   :  { %1238 = vmatpush1.bf16.msra.mxu0 %v3328_v40 }
  0x92   :  { %1239 = vmatprep.subr.bf16.mxu0 %v3336_v43 }
  0x93   :  { %3201 = vmatpush3.bf16.msra.mxu1 %v3297_v17 }
  0x94   :  { %3202 = vmatprep.subr.bf16.mxu1 %v3652_v0 }
  0x95   :  { %1240 = vmatpush1.bf16.msra.mxu0 %v3334_v44 }
  0x96   :  { %1241 = vmatprep.subr.bf16.mxu0 %v3342_v47 }
  0x97   :  { %3203 = vmatpush3.bf16.msra.mxu1 %v3299_v18 }
  0x98   :  { %3204 = vmatprep.subr.bf16.mxu1 %v3652_v0 }
  0x99   :  { %1242 = vmatpush1.bf16.msra.mxu0 %v3340_v49 }
  0x9a   :  { %1243 = vmatprep.subr.bf16.mxu0 %v3348_v52 }
  0x9b   :  { %3205 = vmatpush3.bf16.msra.mxu1 %v3301_v19 }
  0x9c   :  { %3206 = vmatprep.subr.bf16.mxu1 %v3652_v0 }
  0x9d   :  { %1244 = vmatpush1.bf16.msra.mxu0 %v3346_v53 }
  0x9e   :  { %1245 = vmatprep.subr.bf16.mxu0 %v3354_v57  ;;  %v3362_v57 = vld [vmem:[%s4214_s3 + $0x160] ss:$8 sps:$4 sm:$0xff]  }
  0x9f   :  { %3207 = vmatpush3.bf16.msra.mxu1 %v3303_v21 }
  0xa0   :  { %3208 = vmatprep.subr.bf16.mxu1 %v3652_v0  ;;  %v3313_v0 = vld [vmem:[%s4214_s3 + $0x60] ss:$8 sps:$4 sm:$0xff]  }
  0xa1   :  { %1246 = vmatpush1.bf16.msra.mxu0 %v3352_v56 }
  0xa2   :  { %1247 = vmatprep.subr.bf16.mxu0 %v3361_v59 }
  0xa3   :  { %3209 = vmatpush3.bf16.msra.mxu1 %v3307_v24 }
  0xa4   :  { %1074 = vmatprep.subr.bf16.mxu1 %v3312_v29 }
  0xa5   :  { %1248 = vmatpush1.bf16.msra.mxu0 %v3359_v60  ;;  %v3369_v60 = vld [vmem:[%s4214_s3 + $0x154] ss:$8 sps:$4 sm:$0xff]  }
  0xa6   :  { %3211 = vmatmul.mubr.bf16.vlgmr.msra.gmra.mxu1 %v722_v27 }
  0xa7   :  { %1075 = vmatpush1.bf16.msra.mxu1 %v3310_v28  ;;  %1106 = vmatprep.mubr.bf16.mxu1 %v3654_v48 }
  0xa8   :  { %1076 = vmatprep.subr.bf16.mxu1 %v3315_v30 }
  0xab   :  { %1077 = vmatpush1.bf16.msra.mxu1 %v3313_v0 }
  0xac   :  { %1078 = vmatprep.subr.bf16.mxu1 %v3321_v33 }
  0xaf   :  { %1079 = vmatpush1.bf16.msra.mxu1 %v3319_v34 }
  0xb0   :  { %1080 = vmatprep.subr.bf16.mxu1 %v3327_v37 }
  0xb3   :  { %1081 = vmatpush1.bf16.msra.mxu1 %v3325_v38 }
  0xb4   :  { %1082 = vmatprep.subr.bf16.mxu1 %v3333_v41 }
  0xb7   :  { %1083 = vmatpush1.bf16.msra.mxu1 %v3331_v42 }
  0xb8   :  { %1084 = vmatprep.subr.bf16.mxu1 %v3339_v45 }
  0xbb   :  { %1085 = vmatpush1.bf16.msra.mxu1 %v3337_v46 }
  0xbc   :  { %1086 = vmatprep.subr.bf16.mxu1 %v3345_v50  ;;  %v3355_v50 = vld [vmem:[%s4214_s3 + $0x170] ss:$8 sps:$4 sm:$0xff]  }
  0xbf   :  { %1087 = vmatpush1.bf16.msra.mxu1 %v3343_v51  ;;  %v3364_v51 = vld [vmem:[%s4214_s3 + $0x164] ss:$8 sps:$4 sm:$0xff]  }
  0xc0   :  { %1088 = vmatprep.subr.bf16.mxu1 %v3351_v55 }
  0xc3   :  { %1089 = vmatpush1.bf16.msra.mxu1 %v3349_v54 }
  0xc4   :  { %1389 = vmatprep.subr.bf16.mxu1 %v3357_v58 }
 0x106   :  { %v202_v61 = vpop.f32.mrf.mxu1  ;;  %v442_v2 = vpop.f32.mrf.mxu0 }
 0x107   :  { %v209_v7 = vadd.f32 %v2638_v6, %v202_v61 }
 0x108   :  { %v3112_v62 = vpop.f32.mrf.mxu1  ;;  %v3152_v3 = vpop.f32.mrf.mxu0 }
 0x109   :  { %v3367_v62 = vld [vmem:[%s4214_s3 + $0x150] ss:$8 sps:$4 sm:$0xff]  }
 0x10a   :  { %v205_v63 = vpop.f32.mrf.mxu1  ;;  %v445_v4 = vpop.f32.mrf.mxu0  ;;  %v3373_v3 = vld [vmem:[%s4214_s3 + $0x130] ss:$8 sps:$4 sm:$0xff]  }
 0x10b   :  { %v210_v11 = vadd.f32 %v2638_v6, %v205_v63  ;;  %v3372_v63 = vld [vmem:[%s4214_s3 + $0x144] ss:$8 sps:$4 sm:$0xff]   ;;  %v3381_v6 = vld [vmem:[%s4214_s3 + $0x114] ss:$8 sps:$4 sm:$0xff]  }
 0x10c   :  { %v3113_v1 = vpop.f32.mrf.mxu1  ;;  %v3153_v5 = vpop.f32.mrf.mxu0 }
 0x10d   :  { %v3370_v1 = vld [vmem:[%s4214_s3 + $0x140] ss:$8 sps:$4 sm:$0xff]  }
 0x10e   :  { %v3376_v5 = vld [vmem:[%s4214_s3 + $0x120] ss:$8 sps:$4 sm:$0xff]  }
 0x126   :  { %v318_v8 = vpop.f32.mrf.mxu1 }
 0x127   :  { %v325_v9 = vadd.f32 %v318_v8, %v209_v7  ;;  %v3379_v7 = vld [vmem:[%s4214_s3 + $0x110] ss:$8 sps:$4 sm:$0xff]   ;;  %v3384_v8 = vld [vmem:[%s4214_s3 + $0x104] ss:$8 sps:$4 sm:$0xff]  }
 0x128   :  { %v3132_v10 = vpop.f32.mrf.mxu1  ;;  %v686_v17 = vpop.f32.mrf.mxu0 }
 0x129   :  { %v449_v12 = vadd.f32 %v442_v2, %v325_v9  ;;  %v3375_v2 = vld [vmem:[%s4214_s3 + $0x134] ss:$8 sps:$4 sm:$0xff]  }
 0x12a   :  { %v321_v13 = vpop.f32.mrf.mxu1  ;;  %v3192_v18 = vpop.f32.mrf.mxu0 }
 0x12b   :  { %v326_v14 = vadd.f32 %v321_v13, %v210_v11  ;;  %v3392_v18 = vld [vmem:[#allocation5 + $0x64] ss:$8 sps:$4 sm:$0xff]  }
 0x12c   :  { %v3133_v15 = vpop.f32.mrf.mxu1  ;;  %v689_v19 = vpop.f32.mrf.mxu0 }
 0x12d   :  { %v450_v16 = vadd.f32 %v445_v4, %v326_v14  ;;  %v3378_v4 = vld [vmem:[%s4214_s3 + $0x124] ss:$8 sps:$4 sm:$0xff]  }
 0x12e   :  { %v3193_v20 = vpop.f32.mrf.mxu0 }
 0x12f   :  { %v3390_v20 = vld [vmem:[#allocation5 + $0x60] ss:$8 sps:$4 sm:$0xff]  }
 0x146   :  { %v565_v21 = vpop.f32.mrf.mxu1 }
 0x147   :  { %v572_v29 = vadd.f32 %v565_v21, %v449_v12  ;;  %v3382_v12 = vld [vmem:[%s4214_s3 + $0x100] ss:$8 sps:$4 sm:$0xff]  }
 0x148   :  { %v3172_v22 = vpop.f32.mrf.mxu1  ;;  %v927_v25 = vpop.f32.mrf.mxu0  ;;  %v3393_v21 = vld [vmem:[#allocation5 + $0xf0] ss:$8 sps:$4 sm:$0xff]  }
 0x149   :  { %v693_v0 = vadd.f32 %v686_v17, %v572_v29  ;;  %v3389_v17 = vld [vmem:[#allocation5 + $0x74] ss:$8 sps:$4 sm:$0xff]   ;;  %v3405_v29 = vld [vmem:[#allocation5 + $0xd0] ss:$8 sps:$4 sm:$0xff]  }
 0x14a   :  { %v568_v23 = vpop.f32.mrf.mxu1  ;;  %v3232_v26 = vpop.f32.mrf.mxu0  ;;  %1578 = vmatprep.subr.bf16.mxu0 %v3389_v17  ;;  %v3398_v22 = vld [vmem:[#allocation5 + $0x54] ss:$8 sps:$4 sm:$0xff]  }
 0x14b   :  { %v573_v30 = vadd.f32 %v568_v23, %v450_v16  ;;  %v3387_v16 = vld [vmem:[#allocation5 + $0x70] ss:$8 sps:$4 sm:$0xff]   ;;  %v3401_v23 = vld [vmem:[#allocation5 + $0xe4] ss:$8 sps:$4 sm:$0xff]  }
 0x14c   :  { %v3173_v24 = vpop.f32.mrf.mxu1  ;;  %v930_v27 = vpop.f32.mrf.mxu0  ;;  %v3404_v26 = vld [vmem:[#allocation5 + $0x44] ss:$8 sps:$4 sm:$0xff]  }
 0x14d   :  { %v694_v35 = vadd.f32 %v689_v19, %v573_v30  ;;  %v3395_v19 = vld [vmem:[#allocation5 + $0xf4] ss:$8 sps:$4 sm:$0xff]   ;;  %v3396_v24 = vld [vmem:[#allocation5 + $0x50] ss:$8 sps:$4 sm:$0xff]  }
 0x14e   :  { %v3233_v28 = vpop.f32.mrf.mxu0  ;;  %v3410_v30 = vld [vmem:[#allocation5 + $0x34] ss:$8 sps:$4 sm:$0xff]  }
 0x14f   :  { %v3402_v28 = vld [vmem:[#allocation5 + $0x40] ss:$8 sps:$4 sm:$0xff]  }
 0x166   :  { %v806_v31 = vpop.f32.mrf.mxu1 }
 0x167   :  { %v813_v32 = vadd.f32 %v806_v31, %v693_v0  ;;  %v3413_v0 = vld [vmem:[#allocation5 + $0xc4] ss:$8 sps:$4 sm:$0xff]   ;;  %v3408_v31 = vld [vmem:[#allocation5 + $0x30] ss:$8 sps:$4 sm:$0xff]  }
 0x168   :  { %v3212_v33 = vpop.f32.mrf.mxu1 }
 0x169   :  { %v934_v34 = vadd.f32 %v927_v25, %v813_v32  ;;  %v3399_v25 = vld [vmem:[#allocation5 + $0xe0] ss:$8 sps:$4 sm:$0xff]   ;;  %v3416_v33 = vld [vmem:[#allocation5 + $0x24] ss:$8 sps:$4 sm:$0xff]  }
 0x16a   :  { %v809_v36 = vpop.f32.mrf.mxu1  ;;  %v3411_v32 = vld [vmem:[#allocation5 + $0xc0] ss:$8 sps:$4 sm:$0xff]  }
 0x16b   :  { %v936_v37 = vmax.f32 %v934_v34, 0.0  ;;  %v814_v38 = vadd.f32 %v809_v36, %v694_v35  ;;  %v3419_v34 = vld [vmem:[#allocation5 + $0xb4] ss:$8 sps:$4 sm:$0xff]   ;;  %v3414_v35 = vld [vmem:[#allocation5 + $0x20] ss:$8 sps:$4 sm:$0xff]  }
 0x16c   :  { %v3213_v39 = vpop.f32.mrf.mxu1  ;;  %v3417_v36 = vld [vmem:[#allocation5 + $0xb0] ss:$8 sps:$4 sm:$0xff]  }
 0x16d   :  { %v3026_v40 = vpack.c.bf16 %v936_v37, %v936_v37  ;;  %v935_v41 = vadd.f32 %v930_v27, %v814_v38  ;;  %v3407_v27 = vld [vmem:[#allocation5 + $0xd4] ss:$8 sps:$4 sm:$0xff]   ;;  %v3425_v38 = vld [vmem:[#allocation5 + $0xa4] ss:$8 sps:$4 sm:$0xff]   ;;  %v3420_v39 = vld [vmem:[#allocation5 + $0x10] ss:$8 sps:$4 sm:$0xff]  }
 0x16e   :  { %v3422_v37 = vld [vmem:[#allocation5 + $0x14] ss:$8 sps:$4 sm:$0xff]  }
 0x16f   :  { %v947_v42 = vrot.slane %v3026_v40, 7  ;;  %v937_v43 = vmax.f32 %v935_v41, 0.0  ;;  %v3423_v40 = vld [vmem:[#allocation5 + $0xa0] ss:$8 sps:$4 sm:$0xff]  }
 0x170   :  { %v3426_v41 = vld [vmem:[#allocation5] ss:$8 sps:$4 sm:$0xff]  }
 0x171   :  { %955 = vst [vmem:[#allocation2] sm:$0xe] %v947_v42  ;;  %v3027_v44 = vpack.c.bf16 %v937_v43, %v937_v43  ;;  %v948_v45 = vrot.slane %v947_v42, 4  ;;  %v3428_v42 = vld [vmem:[#allocation5 + $0x4] ss:$8 sps:$4 sm:$0xff]  }
 0x172   :  { %v3429_v43 = vld [vmem:[#allocation5 + $0x90] ss:$8 sps:$4 sm:$0xff]  }
 0x173   :  { %v949_v46 = vrot.slane %v3027_v44, 7  ;;  %v3431_v44 = vld [vmem:[#allocation5 + $0x94] ss:$8 sps:$4 sm:$0xff]  }
 0x175   :  { %v950_v47 = vsel %vm946_vm6, %v948_v45, %v949_v46  ;;  %v951_v49 = vrot.slane %v949_v46, 4  ;;  %v3434_v45 = vld [vmem:[#allocation5 + $0x174] ss:$8 sps:$4 sm:$0xff]   ;;  %v3437_v46 = vld [vmem:[#allocation5 + $0x84] ss:$8 sps:$4 sm:$0xff]  }
 0x176   :  { %956 = vst [vmem:[#allocation2 + $0x4] sm:$0xf] %v950_v47  ;;  %v3435_v47 = vld [vmem:[#allocation5 + $0x80] ss:$8 sps:$4 sm:$0xff]  }
 0x177   :  { %957 = vst [vmem:[#allocation2 + $0x8] sm:$0x1] %v951_v49  ;;  %v960_v49 = vlaneseq }
 0x178   :  { %v1121_v52 = vld [vmem:[#allocation2] sm:$0xe] }
 0x179   :  { %v1280_v9 = vld [vmem:[#allocation2] sm:$0xc] }
 0x17d   :  { %v3358_v53 = vld [vmem:[#allocation2] sm:$0xff]  }
 0x17e   :  { %v1122_v54 = vld [vmem:[#allocation2 + $0x4] sm:$0xf]  ;;  %v3366_v56 = vld [vmem:[#allocation2 + $0x8] ss:$0 sps:$4 sm:$0x11]   ;;  %1107 = vmatmul.mubr.bf16.vlgmr.msra.gmra.mxu1 %v3358_v53 }
 0x17f   :  { %v2838_v55 = vcombine.low %v1121_v52, %v1122_v54  ;;  %1390 = vmatpush1.bf16.msra.mxu1 %v3355_v50  ;;  %v1150_v59 = vrot.slane %v3366_v56, 1  ;;  %1421 = vmatprep.mubr.bf16.mxu1 %v3654_v48  ;;  %v2872_v10 = vcombine.low %v1280_v9, %v1122_v54  ;;  %v3386_v11 = vld [vmem:[#allocation2 + $0x8] ss:$0 sps:$4 sm:$0x33]   ;;  %v961_v50 = vshrl.u32 %v960_v49, 7 }
 0x180   :  { %1391 = vmatprep.subr.bf16.mxu1 %v3364_v51  ;;  %v1306_v14 = vrot.slane %v3386_v11, 2  ;;  %v958_v53 = vld [vmem:[%s4219_s8] sm:$0x3] }
 0x181   :  { %v1149_v58 = vrot.slane %v2838_v55, 1  ;;  %v1305_v13 = vrot.slane %v2872_v10, 2  ;;  %v4180_v52 = vsub.s32 0, %v961_v50  ;;  %v4185_v56 = vsub.s32 1, %v961_v50  ;;  %v3457_v49 = vld [vmem:[#allocation5 + $0x100] ss:$8 sps:$4 sm:$0xff]  }
 0x183   :  { %v1151_v61 = vsel %vm355_vm1, %v1149_v58, %v1150_v59  ;;  %1392 = vmatpush1.bf16.msra.mxu1 %v3362_v57  ;;  %v1307_v15 = vsel %vm599_vm2, %v1305_v13, %v1306_v14  ;;  %v963_v57 = vrot.slane %v958_v53, %v4180_v52 }
 0x184   :  { %1266 = vmatmul.mubr.bf16.vlgmr.msra.gmra.mxu0 %v1151_v61  ;;  %1393 = vmatprep.subr.bf16.mxu1 %v3369_v60  ;;  %v967_v60 = vrot.slane %v958_v53, %v4185_v56  ;;  %v3461_v53 = vld [vmem:[#allocation7 + $0x70] ss:$8 sps:$4 sm:$0xff]  }
 0x185   :  { %1610 = vmatprep.mubr.bf16.mxu0 %v3654_v48  ;;  %1579 = vmatpush1.bf16.msra.mxu0 %v3387_v16 }
 0x186   :  { %1580 = vmatprep.subr.bf16.mxu0 %v3392_v18 }
 0x187   :  { %1394 = vmatpush1.bf16.msra.mxu1 %v3367_v62 }
 0x188   :  { %1395 = vmatprep.subr.bf16.mxu1 %v3372_v63 }
 0x189   :  { %1581 = vmatpush1.bf16.msra.mxu0 %v3390_v20 }
 0x18a   :  { %1582 = vmatprep.subr.bf16.mxu0 %v3398_v22 }
 0x18b   :  { %1396 = vmatpush1.bf16.msra.mxu1 %v3370_v1 }
 0x18c   :  { %1397 = vmatprep.subr.bf16.mxu1 %v3375_v2 }
 0x18d   :  { %1583 = vmatpush1.bf16.msra.mxu0 %v3396_v24 }
 0x18e   :  { %1584 = vmatprep.subr.bf16.mxu0 %v3404_v26 }
 0x18f   :  { %1398 = vmatpush1.bf16.msra.mxu1 %v3373_v3 }
 0x190   :  { %1399 = vmatprep.subr.bf16.mxu1 %v3378_v4 }
 0x191   :  { %1585 = vmatpush1.bf16.msra.mxu0 %v3402_v28 }
 0x192   :  { %1586 = vmatprep.subr.bf16.mxu0 %v3410_v30 }
 0x193   :  { %1400 = vmatpush1.bf16.msra.mxu1 %v3376_v5 }
 0x194   :  { %1401 = vmatprep.subr.bf16.mxu1 %v3381_v6 }
 0x195   :  { %1587 = vmatpush1.bf16.msra.mxu0 %v3408_v31  ;;  %v3432_v31 = vld [vmem:[#allocation5 + $0x170] ss:$8 sps:$4 sm:$0xff]  }
 0x196   :  { %1588 = vmatprep.subr.bf16.mxu0 %v3416_v33 }
 0x197   :  { %1402 = vmatpush1.bf16.msra.mxu1 %v3379_v7 }
 0x198   :  { %1403 = vmatprep.subr.bf16.mxu1 %v3384_v8 }
 0x199   :  { %1589 = vmatpush1.bf16.msra.mxu0 %v3414_v35  ;;  %v3438_v35 = vld [vmem:[#allocation5 + $0x160] ss:$8 sps:$4 sm:$0xff]  }
 0x19a   :  { %1590 = vmatprep.subr.bf16.mxu0 %v3422_v37  ;;  %v3444_v37 = vld [vmem:[#allocation5 + $0x154] ss:$8 sps:$4 sm:$0xff]  }
 0x19b   :  { %1404 = vmatpush1.bf16.msra.mxu1 %v3382_v12 }
 0x19c   :  { %1727 = vmatprep.subr.bf16.mxu1 %v3395_v19 }
 0x19d   :  { %1591 = vmatpush1.bf16.msra.mxu0 %v3420_v39  ;;  %v3447_v39 = vld [vmem:[#allocation5 + $0x144] ss:$8 sps:$4 sm:$0xff]  }
 0x19e   :  { %1422 = vmatmul.mubr.bf16.vlgmr.msra.gmra.mxu1 %v1307_v15  ;;  %1592 = vmatprep.subr.bf16.mxu0 %v3428_v42  ;;  %v3448_v42 = vld [vmem:[#allocation5 + $0x130] ss:$8 sps:$4 sm:$0xff]  }
 0x19f   :  { %1759 = vmatprep.mubr.bf16.mxu1 %v3654_v48  ;;  %1728 = vmatpush1.bf16.msra.mxu1 %v3393_v21 }
 0x1a0   :  { %1729 = vmatprep.subr.bf16.mxu1 %v3401_v23 }
 0x1a1   :  { %1593 = vmatpush1.bf16.msra.mxu0 %v3426_v41  ;;  %v3450_v41 = vld [vmem:[#allocation5 + $0x134] ss:$8 sps:$4 sm:$0xff]  }
 0x1a2   :  { %1876 = vmatprep.subr.bf16.mxu0 %v3434_v45  ;;  %v3456_v45 = vld [vmem:[#allocation5 + $0x114] ss:$8 sps:$4 sm:$0xff]  }
 0x1a3   :  { %1730 = vmatpush1.bf16.msra.mxu1 %v3399_v25 }
 0x1a4   :  { %1731 = vmatprep.subr.bf16.mxu1 %v3407_v27 }
 0x1a7   :  { %1732 = vmatpush1.bf16.msra.mxu1 %v3405_v29 }
 0x1a8   :  { %1733 = vmatprep.subr.bf16.mxu1 %v3413_v0 }
 0x1ab   :  { %1734 = vmatpush1.bf16.msra.mxu1 %v3411_v32  ;;  %v3440_v32 = vld [vmem:[#allocation5 + $0x164] ss:$8 sps:$4 sm:$0xff]  }
 0x1ac   :  { %1735 = vmatprep.subr.bf16.mxu1 %v3419_v34 }
 0x1af   :  { %1736 = vmatpush1.bf16.msra.mxu1 %v3417_v36 }
 0x1b0   :  { %1737 = vmatprep.subr.bf16.mxu1 %v3425_v38  ;;  %v3442_v38 = vld [vmem:[#allocation5 + $0x150] ss:$8 sps:$4 sm:$0xff]  }
 0x1b3   :  { %1738 = vmatpush1.bf16.msra.mxu1 %v3423_v40  ;;  %v3445_v40 = vld [vmem:[#allocation5 + $0x140] ss:$8 sps:$4 sm:$0xff]  }
 0x1b4   :  { %1739 = vmatprep.subr.bf16.mxu1 %v3431_v44  ;;  %v3451_v44 = vld [vmem:[#allocation5 + $0x120] ss:$8 sps:$4 sm:$0xff]  }
 0x1b7   :  { %1740 = vmatpush1.bf16.msra.mxu1 %v3429_v43  ;;  %v3453_v43 = vld [vmem:[#allocation5 + $0x124] ss:$8 sps:$4 sm:$0xff]  }
 0x1b8   :  { %1741 = vmatprep.subr.bf16.mxu1 %v3437_v46  ;;  %v3454_v46 = vld [vmem:[#allocation5 + $0x110] ss:$8 sps:$4 sm:$0xff]  }
 0x1bb   :  { %1742 = vmatpush1.bf16.msra.mxu1 %v3435_v47  ;;  %v3459_v47 = vld [vmem:[#allocation5 + $0x104] ss:$8 sps:$4 sm:$0xff]  }
 0x23e   :  { %v1108_v51 = vpop.f32.mrf.mxu1 }
 0x23f   :  { %v1117_v61 = vadd.f32 %v1108_v51, %v963_v57 }
 0x240   :  { %v1110_v54 = vpop.f32.mrf.mxu1 }
 0x241   :  { %v1118_v1 = vadd.f32 %v1110_v54, %v967_v60  ;;  %v3463_v54 = vld [vmem:[#allocation7 + $0x74] ss:$8 sps:$4 sm:$0xff]  }
 0x242   :  { %v1112_v58 = vpop.f32.mrf.mxu1  ;;  %2043 = vmatprep.subr.bf16.mxu1 %v3463_v54  ;;  %v3506_v54 = vld [vmem:[#allocation7 + $0x170] ss:$8 sps:$4 sm:$0xff]  }
 0x243   :  { %v1119_v4 = vadd.f32 %v1112_v58, %v963_v57  ;;  %v3467_v57 = vld [vmem:[#allocation7 + $0xf0] ss:$8 sps:$4 sm:$0xff]   ;;  %v3469_v58 = vld [vmem:[#allocation7 + $0xf4] ss:$8 sps:$4 sm:$0xff]  }
 0x244   :  { %v1267_v55 = vpop.f32.mrf.mxu0  ;;  %v1114_v62 = vpop.f32.mrf.mxu1 }
 0x245   :  { %v1276_v2 = vadd.f32 %v1267_v55, %v1117_v61  ;;  %v1120_v9 = vadd.f32 %v1114_v62, %v967_v60  ;;  %v3466_v55 = vld [vmem:[#allocation7 + $0x64] ss:$8 sps:$4 sm:$0xff]   ;;  %v3472_v60 = vld [vmem:[#allocation7 + $0x54] ss:$8 sps:$4 sm:$0xff]   ;;  %v3470_v62 = vld [vmem:[#allocation7 + $0x50] ss:$8 sps:$4 sm:$0xff]  }
 0x246   :  { %v1269_v59 = vpop.f32.mrf.mxu0  ;;  %v3475_v61 = vld [vmem:[#allocation7 + $0xe4] ss:$8 sps:$4 sm:$0xff]  }
 0x247   :  { %v1277_v5 = vadd.f32 %v1269_v59, %v1118_v1  ;;  %v3464_v59 = vld [vmem:[#allocation7 + $0x60] ss:$8 sps:$4 sm:$0xff]   ;;  %v3478_v1 = vld [vmem:[#allocation7 + $0x44] ss:$8 sps:$4 sm:$0xff]  }
 0x248   :  { %v1271_v63 = vpop.f32.mrf.mxu0 }
 0x249   :  { %v1278_v10 = vadd.f32 %v1271_v63, %v1119_v4  ;;  %v3473_v63 = vld [vmem:[#allocation7 + $0xe0] ss:$8 sps:$4 sm:$0xff]   ;;  %v3479_v4 = vld [vmem:[#allocation7 + $0xd0] ss:$8 sps:$4 sm:$0xff]  }
 0x24a   :  { %v1273_v7 = vpop.f32.mrf.mxu0 }
 0x24b   :  { %v1279_v13 = vadd.f32 %v1273_v7, %v1120_v9  ;;  %v3482_v7 = vld [vmem:[#allocation7 + $0x30] ss:$8 sps:$4 sm:$0xff]   ;;  %v3490_v9 = vld [vmem:[#allocation7 + $0x24] ss:$8 sps:$4 sm:$0xff]  }
 0x25e   :  { %v1423_v3 = vpop.f32.mrf.mxu1 }
 0x25f   :  { %v1432_v6 = vadd.f32 %v1423_v3, %v1276_v2  ;;  %v3481_v2 = vld [vmem:[#allocation7 + $0xd4] ss:$8 sps:$4 sm:$0xff]   ;;  %v3476_v3 = vld [vmem:[#allocation7 + $0x40] ss:$8 sps:$4 sm:$0xff]  }
 0x260   :  { %v1425_v8 = vpop.f32.mrf.mxu1 }
 0x261   :  { %v1433_v11 = vadd.f32 %v1425_v8, %v1277_v5  ;;  %v1436_v14 = vmax.f32 %v1432_v6, 0.0  ;;  %v3484_v5 = vld [vmem:[#allocation7 + $0x34] ss:$8 sps:$4 sm:$0xff]   ;;  %v3487_v6 = vld [vmem:[#allocation7 + $0xc4] ss:$8 sps:$4 sm:$0xff]  }
 0x262   :  { %v1427_v12 = vpop.f32.mrf.mxu1  ;;  %v3485_v8 = vld [vmem:[#allocation7 + $0xc0] ss:$8 sps:$4 sm:$0xff]  }
 0x263   :  { %v1437_v15 = vmax.f32 %v1433_v11, 0.0  ;;  %v1434_v16 = vadd.f32 %v1427_v12, %v1278_v10  ;;  %v3493_v10 = vld [vmem:[#allocation7 + $0xb4] ss:$8 sps:$4 sm:$0xff]   ;;  %v3488_v11 = vld [vmem:[#allocation7 + $0x20] ss:$8 sps:$4 sm:$0xff]  }
 0x264   :  { %v1429_v17 = vpop.f32.mrf.mxu1  ;;  %v3491_v12 = vld [vmem:[#allocation7 + $0xb0] ss:$8 sps:$4 sm:$0xff]  }
 0x265   :  { %v1440_v18 = vmax.f32 %v1436_v14, %v1437_v15  ;;  %v1435_v19 = vadd.f32 %v1429_v17, %v1279_v13  ;;  %v1438_v21 = vmax.f32 %v1434_v16, 0.0  ;;  %v3496_v13 = vld [vmem:[#allocation7 + $0x14] ss:$8 sps:$4 sm:$0xff]   ;;  %v3499_v14 = vld [vmem:[#allocation7 + $0xa4] ss:$8 sps:$4 sm:$0xff]  }
 0x266   :  { %v3494_v15 = vld [vmem:[#allocation7 + $0x10] ss:$8 sps:$4 sm:$0xff]   ;;  %v3497_v16 = vld [vmem:[#allocation7 + $0xa0] ss:$8 sps:$4 sm:$0xff]   ;;  %v3502_v17 = vld [vmem:[#allocation7 + $0x4] ss:$8 sps:$4 sm:$0xff]  }
 0x267   :  { %v1443_v20 = vrot.slane %v1440_v18, 2  ;;  %v1439_v22 = vmax.f32 %v1435_v19, 0.0  ;;  %v3503_v19 = vld [vmem:[#allocation7 + $0x90] ss:$8 sps:$4 sm:$0xff]  }
 0x269   :  { %v1445_v23 = vmax.f32 %v1440_v18, %v1443_v20  ;;  %v1441_v24 = vmax.f32 %v1438_v21, %v1439_v22  ;;  %v3500_v18 = vld [vmem:[#allocation7] ss:$8 sps:$4 sm:$0xff]   ;;  %v3505_v20 = vld [vmem:[#allocation7 + $0x94] ss:$8 sps:$4 sm:$0xff]   ;;  %v3511_v22 = vld [vmem:[#allocation7 + $0x84] ss:$8 sps:$4 sm:$0xff]  }
 0x26a   :  { %v3508_v21 = vld [vmem:[#allocation7 + $0x174] ss:$8 sps:$4 sm:$0xff]  }
 0x26b   :  { %v1446_v25 = vpack.c.bf16 %v1445_v23, %v1445_v23  ;;  %v1455_v26 = vrot.slane %v1441_v24, 2  ;;  %v3509_v23 = vld [vmem:[#allocation7 + $0x80] ss:$8 sps:$4 sm:$0xff]  }
 0x26d   :  { %v1450_v27 = vrot.slane %v1446_v25, 7  ;;  %1453 = vst [vmem:[#allocation3] sm:$0x4] %v1446_v25  ;;  %v1457_v28 = vmax.f32 %v1441_v24, %v1455_v26  ;;  %v3537_v24 = vld [vmem:[#allocation9 + $0x74] ss:$8 sps:$4 sm:$0xff]  }
 0x26f   :  { %1452 = vst [vmem:[#allocation3] sm:$0x2] %v1450_v27  ;;  %v3029_v29 = vpack.c.bf16 %v1457_v28, %v1457_v28 }
 0x271   :  { %v1462_v30 = vrot.slane %v3029_v29, 5  ;;  %v2892_v0 = vrot.slane %v3029_v29, 10 }
 0x273   :  { %1464 = vst [vmem:[#allocation3] sm:$0x8] %v1462_v30  ;;  %1468 = vst [vmem:[#allocation3 + $0x4] sm:$0x1] %v2892_v0 }
 0x27a   :  { %v1481_v33 = vld [vmem:[#allocation3] sm:$0xf] }
 0x27b   :  { %1611 = vmatmul.mubr.bf16.vlgmr.msra.gmra.mxu0 %v1481_v33  ;;  %v3441_v34 = vld [vmem:[#allocation3] sm:$0x1e]  }
 0x27c   :  { %1877 = vmatpush1.bf16.msra.mxu0 %v3432_v31  ;;  %1908 = vmatprep.mubr.bf16.mxu0 %v3654_v48  ;;  %v1645_v36 = vrot.slane %v3441_v34, 1  ;;  %v3460_v50 = vld [vmem:[#allocation3] sm:$0x3c]  }
 0x27d   :  { %1878 = vmatprep.subr.bf16.mxu0 %v3440_v32  ;;  %v1794_v51 = vrot.slane %v3460_v50, 2  ;;  %v1469_v32 = vld [vmem:[%s4220_s9] sm:$0x3] }
 0x27e   :  { %1760 = vmatmul.mubr.bf16.vlgmr.msra.gmra.mxu1 %v1645_v36  ;;  %v1474_v33 = vrot.slane %v1469_v32, %v4180_v52  ;;  %v1478_v34 = vrot.slane %v1469_v32, %v4185_v56  ;;  %v3568_v32 = vld [vmem:[#allocation9 + $0xc0] ss:$8 sps:$4 sm:$0xff]  }
 0x27f   :  { %2075 = vmatprep.mubr.bf16.mxu1 %v3654_v48  ;;  %2044 = vmatpush1.bf16.msra.mxu1 %v3461_v53 }
 0x280   :  { %1879 = vmatpush1.bf16.msra.mxu0 %v3438_v35  ;;  %2045 = vmatprep.subr.bf16.mxu1 %v3466_v55  ;;  %v3514_v55 = vld [vmem:[#allocation7 + $0x164] ss:$8 sps:$4 sm:$0xff]  }
 0x281   :  { %1880 = vmatprep.subr.bf16.mxu0 %v3444_v37 }
 0x283   :  { %2046 = vmatpush1.bf16.msra.mxu1 %v3464_v59  ;;  %v3512_v59 = vld [vmem:[#allocation7 + $0x160] ss:$8 sps:$4 sm:$0xff]  }
 0x284   :  { %1881 = vmatpush1.bf16.msra.mxu0 %v3442_v38  ;;  %2047 = vmatprep.subr.bf16.mxu1 %v3472_v60  ;;  %v3535_v60 = vld [vmem:[#allocation9 + $0x70] ss:$8 sps:$4 sm:$0xff]  }
 0x285   :  { %1882 = vmatprep.subr.bf16.mxu0 %v3447_v39 }
 0x287   :  { %2048 = vmatpush1.bf16.msra.mxu1 %v3470_v62  ;;  %v3518_v62 = vld [vmem:[#allocation7 + $0x154] ss:$8 sps:$4 sm:$0xff]  }
 0x288   :  { %1883 = vmatpush1.bf16.msra.mxu0 %v3445_v40  ;;  %2049 = vmatprep.subr.bf16.mxu1 %v3478_v1  ;;  %v3516_v1 = vld [vmem:[#allocation7 + $0x150] ss:$8 sps:$4 sm:$0xff]  }
 0x289   :  { %1884 = vmatprep.subr.bf16.mxu0 %v3450_v41 }
 0x28b   :  { %2050 = vmatpush1.bf16.msra.mxu1 %v3476_v3  ;;  %v3521_v3 = vld [vmem:[#allocation7 + $0x144] ss:$8 sps:$4 sm:$0xff]  }
 0x28c   :  { %1885 = vmatpush1.bf16.msra.mxu0 %v3448_v42  ;;  %2051 = vmatprep.subr.bf16.mxu1 %v3484_v5  ;;  %v3519_v5 = vld [vmem:[#allocation7 + $0x140] ss:$8 sps:$4 sm:$0xff]  }
 0x28d   :  { %1886 = vmatprep.subr.bf16.mxu0 %v3453_v43 }
 0x28f   :  { %2052 = vmatpush1.bf16.msra.mxu1 %v3482_v7  ;;  %v3546_v7 = vld [vmem:[#allocation9 + $0x44] ss:$8 sps:$4 sm:$0xff]  }
 0x290   :  { %1887 = vmatpush1.bf16.msra.mxu0 %v3451_v44  ;;  %2053 = vmatprep.subr.bf16.mxu1 %v3490_v9  ;;  %v3544_v9 = vld [vmem:[#allocation9 + $0x40] ss:$8 sps:$4 sm:$0xff]  }
 0x291   :  { %1888 = vmatprep.subr.bf16.mxu0 %v3456_v45 }
 0x293   :  { %2054 = vmatpush1.bf16.msra.mxu1 %v3488_v11  ;;  %v3549_v11 = vld [vmem:[#allocation9 + $0x34] ss:$8 sps:$4 sm:$0xff]  }
 0x294   :  { %1889 = vmatpush1.bf16.msra.mxu0 %v3454_v46  ;;  %2055 = vmatprep.subr.bf16.mxu1 %v3496_v13  ;;  %v3547_v13 = vld [vmem:[#allocation9 + $0x30] ss:$8 sps:$4 sm:$0xff]  }
 0x295   :  { %1890 = vmatprep.subr.bf16.mxu0 %v3459_v47 }
 0x297   :  { %2056 = vmatpush1.bf16.msra.mxu1 %v3494_v15  ;;  %v3552_v15 = vld [vmem:[#allocation9 + $0x24] ss:$8 sps:$4 sm:$0xff]  }
 0x298   :  { %1891 = vmatpush1.bf16.msra.mxu0 %v3457_v49  ;;  %2057 = vmatprep.subr.bf16.mxu1 %v3502_v17  ;;  %v3550_v17 = vld [vmem:[#allocation9 + $0x20] ss:$8 sps:$4 sm:$0xff]  }
 0x299   :  { %2189 = vmatprep.subr.bf16.mxu0 %v3469_v58  ;;  %v3515_v58 = vld [vmem:[#allocation4] ss:$0 sps:$4 sm:$0x66]  }
 0x29b   :  { %1909 = vmatmul.mubr.bf16.vlgmr.msra.gmra.mxu0 %v1794_v51  ;;  %2058 = vmatpush1.bf16.msra.mxu1 %v3500_v18  ;;  %v3533_v18 = vld [vmem:[#allocation7 + $0x104] ss:$8 sps:$4 sm:$0xff]  }
 0x29c   :  { %2221 = vmatprep.mubr.bf16.mxu0 %v3654_v48  ;;  %2190 = vmatpush1.bf16.msra.mxu0 %v3467_v57 }
 0x29d   :  { %2191 = vmatprep.subr.bf16.mxu0 %v3475_v61  ;;  %2335 = vmatprep.subr.bf16.mxu1 %v3508_v21  ;;  %v2107_v61 = vrot.slane %v3515_v58, 1 }
 0x2a0   :  { %2192 = vmatpush1.bf16.msra.mxu0 %v3473_v63  ;;  %v3540_v63 = vld [vmem:[#allocation9 + $0x64] ss:$8 sps:$4 sm:$0xff]  }
 0x2a1   :  { %2193 = vmatprep.subr.bf16.mxu0 %v3481_v2  ;;  %v3538_v2 = vld [vmem:[#allocation9 + $0x60] ss:$8 sps:$4 sm:$0xff]  }
 0x2a4   :  { %2194 = vmatpush1.bf16.msra.mxu0 %v3479_v4  ;;  %v3543_v4 = vld [vmem:[#allocation9 + $0x54] ss:$8 sps:$4 sm:$0xff]  }
 0x2a5   :  { %2195 = vmatprep.subr.bf16.mxu0 %v3487_v6  ;;  %v3541_v6 = vld [vmem:[#allocation9 + $0x50] ss:$8 sps:$4 sm:$0xff]  }
 0x2a8   :  { %2196 = vmatpush1.bf16.msra.mxu0 %v3485_v8  ;;  %v3522_v8 = vld [vmem:[#allocation7 + $0x130] ss:$8 sps:$4 sm:$0xff]  }
 0x2a9   :  { %2197 = vmatprep.subr.bf16.mxu0 %v3493_v10  ;;  %v3527_v10 = vld [vmem:[#allocation7 + $0x124] ss:$8 sps:$4 sm:$0xff]  }
 0x2ac   :  { %2198 = vmatpush1.bf16.msra.mxu0 %v3491_v12  ;;  %v3525_v12 = vld [vmem:[#allocation7 + $0x120] ss:$8 sps:$4 sm:$0xff]  }
 0x2ad   :  { %2199 = vmatprep.subr.bf16.mxu0 %v3499_v14  ;;  %v3530_v14 = vld [vmem:[#allocation7 + $0x114] ss:$8 sps:$4 sm:$0xff]  }
 0x2b0   :  { %2200 = vmatpush1.bf16.msra.mxu0 %v3497_v16  ;;  %v3528_v16 = vld [vmem:[#allocation7 + $0x110] ss:$8 sps:$4 sm:$0xff]  }
 0x2b1   :  { %2201 = vmatprep.subr.bf16.mxu0 %v3505_v20  ;;  %v3534_v20 = vld [vmem:[#allocation4] ss:$0 sps:$4 sm:$0xcc]  }
 0x2b2   :  { %v2253_v21 = vrot.slane %v3534_v20, 2 }
 0x2b4   :  { %2202 = vmatpush1.bf16.msra.mxu0 %v3503_v19  ;;  %v3531_v19 = vld [vmem:[#allocation7 + $0x100] ss:$8 sps:$4 sm:$0xff]  }
 0x2b5   :  { %2203 = vmatprep.subr.bf16.mxu0 %v3511_v22  ;;  %v3555_v22 = vld [vmem:[#allocation9 + $0x14] ss:$8 sps:$4 sm:$0xff]  }
 0x2b8   :  { %2204 = vmatpush1.bf16.msra.mxu0 %v3509_v23  ;;  %v3553_v23 = vld [vmem:[#allocation9 + $0x10] ss:$8 sps:$4 sm:$0xff]  }
 0x2b9   :  { %2586 = vmatprep.subr.bf16.mxu0 %v3537_v24  ;;  %v3558_v24 = vld [vmem:[#allocation9 + $0x4] ss:$8 sps:$4 sm:$0xff]  }
 0x2bb   :  { %2222 = vmatmul.mubr.bf16.vlgmr.msra.gmra.mxu0 %v2107_v61 }
 0x2bc   :  { %2587 = vmatpush1.bf16.msra.mxu0 %v3535_v60 }
 0x2bd   :  { %2588 = vmatprep.subr.bf16.mxu0 %v3540_v63 }
 0x2c0   :  { %2589 = vmatpush1.bf16.msra.mxu0 %v3538_v2 }
 0x2c1   :  { %2590 = vmatprep.subr.bf16.mxu0 %v3543_v4 }
 0x2c4   :  { %2591 = vmatpush1.bf16.msra.mxu0 %v3541_v6  ;;  %v2414_v6 = vld [vmem:[%s4222_s11] sm:$0x3] }
 0x2c5   :  { %2592 = vmatprep.subr.bf16.mxu0 %v3546_v7  ;;  %v2423_v7 = vrot.slane %v2414_v6, %v4185_v56 }
 0x2c8   :  { %2593 = vmatpush1.bf16.msra.mxu0 %v3544_v9 }
 0x2c9   :  { %2594 = vmatprep.subr.bf16.mxu0 %v3549_v11 }
 0x2cc   :  { %2595 = vmatpush1.bf16.msra.mxu0 %v3547_v13 }
 0x2cd   :  { %2596 = vmatprep.subr.bf16.mxu0 %v3552_v15 }
 0x2d0   :  { %2597 = vmatpush1.bf16.msra.mxu0 %v3550_v17 }
 0x2d1   :  { %2598 = vmatprep.subr.bf16.mxu0 %v3555_v22 }
 0x2d4   :  { %2599 = vmatpush1.bf16.msra.mxu0 %v3553_v23 }
 0x2d5   :  { %2600 = vmatprep.subr.bf16.mxu0 %v3558_v24 }
 0x33b   :  { %v1612_v25 = vpop.f32.mrf.mxu0 }
 0x33c   :  { %v1619_v35 = vadd.f32 %v1612_v25, %v1474_v33  ;;  %v3556_v25 = vld [vmem:[#allocation9] ss:$8 sps:$4 sm:$0xff]   ;;  %v3573_v33 = vld [vmem:[#allocation9 + $0xb4] ss:$8 sps:$4 sm:$0xff]  }
 0x33d   :  { %v1614_v26 = vpop.f32.mrf.mxu0  ;;  %2601 = vmatpush1.bf16.msra.mxu0 %v3556_v25 }
 0x33e   :  { %v1761_v28 = vpop.f32.mrf.mxu1  ;;  %v1620_v36 = vadd.f32 %v1614_v26, %v1478_v34  ;;  %v3559_v26 = vld [vmem:[#allocation9 + $0xf0] ss:$8 sps:$4 sm:$0xff]  }
 0x33f   :  { %v1616_v27 = vpop.f32.mrf.mxu0  ;;  %v1768_v37 = vadd.f32 %v1761_v28, %v1619_v35  ;;  %v3564_v28 = vld [vmem:[#allocation9 + $0xe4] ss:$8 sps:$4 sm:$0xff]   ;;  %v3571_v34 = vld [vmem:[#allocation9 + $0xb0] ss:$8 sps:$4 sm:$0xff]  }
 0x340   :  { %v1763_v30 = vpop.f32.mrf.mxu1  ;;  %v3561_v27 = vld [vmem:[#allocation9 + $0xf4] ss:$8 sps:$4 sm:$0xff]   ;;  %v3576_v35 = vld [vmem:[#allocation9 + $0xa4] ss:$8 sps:$4 sm:$0xff]  }
 0x341   :  { %v1617_v29 = vpop.f32.mrf.mxu0  ;;  %v1769_v39 = vadd.f32 %v1763_v30, %v1620_v36  ;;  %2602 = vmatprep.subr.bf16.mxu0 %v3561_v27  ;;  %v3567_v30 = vld [vmem:[#allocation9 + $0xd4] ss:$8 sps:$4 sm:$0xff]   ;;  %v3574_v36 = vld [vmem:[#allocation9 + $0xa0] ss:$8 sps:$4 sm:$0xff]  }
 0x342   :  { %v1765_v0 = vpop.f32.mrf.mxu1  ;;  %2603 = vmatpush2.bf16.msra.mxu0 %v3559_v26  ;;  %v3562_v29 = vld [vmem:[#allocation9 + $0xe0] ss:$8 sps:$4 sm:$0xff]  }
 0x343   :  { %2604 = vmatprep.subr.bf16.mxu0 %v3564_v28  ;;  %v3565_v0 = vld [vmem:[#allocation9 + $0xd0] ss:$8 sps:$4 sm:$0xff]  }
 0x344   :  { %v1766_v31 = vpop.f32.mrf.mxu1 }
 0x345   :  { %v3570_v31 = vld [vmem:[#allocation9 + $0xc4] ss:$8 sps:$4 sm:$0xff]  }
 0x346   :  { %2605 = vmatpush2.bf16.msra.mxu0 %v3562_v29 }
 0x347   :  { %2606 = vmatprep.subr.bf16.mxu0 %v3567_v30 }
 0x34a   :  { %2607 = vmatpush2.bf16.msra.mxu0 %v3565_v0 }
 0x34b   :  { %2608 = vmatprep.subr.bf16.mxu0 %v3570_v31 }
 0x34e   :  { %2609 = vmatpush2.bf16.msra.mxu0 %v3568_v32 }
 0x34f   :  { %2610 = vmatprep.subr.bf16.mxu0 %v3573_v33 }
 0x352   :  { %2611 = vmatpush2.bf16.msra.mxu0 %v3571_v34 }
 0x353   :  { %2612 = vmatprep.subr.bf16.mxu0 %v3576_v35 }
 0x356   :  { %2613 = vmatpush2.bf16.msra.mxu0 %v3574_v36 }
 0x35b   :  { %v1910_v38 = vpop.f32.mrf.mxu0 }
 0x35c   :  { %v1917_v40 = vadd.f32 %v1910_v38, %v1768_v37  ;;  %v3579_v37 = vld [vmem:[#allocation9 + $0x94] ss:$8 sps:$4 sm:$0xff]   ;;  %v3577_v38 = vld [vmem:[#allocation9 + $0x90] ss:$8 sps:$4 sm:$0xff]  }
 0x35d   :  { %v1912_v41 = vpop.f32.mrf.mxu0  ;;  %2614 = vmatprep.subr.bf16.mxu0 %v3579_v37 }
 0x35e   :  { %v1918_v42 = vadd.f32 %v1912_v41, %v1769_v39  ;;  %v1919_v44 = vmax.f32 %v1917_v40, 0.0  ;;  %2615 = vmatpush2.bf16.msra.mxu0 %v3577_v38  ;;  %v3582_v39 = vld [vmem:[#allocation9 + $0x84] ss:$8 sps:$4 sm:$0xff]   ;;  %v3580_v40 = vld [vmem:[#allocation9 + $0x80] ss:$8 sps:$4 sm:$0xff]  }
 0x35f   :  { %v1914_v43 = vpop.f32.mrf.mxu0  ;;  %2616 = vmatprep.subr.bf16.mxu0 %v3582_v39 }
 0x360   :  { %v1920_v45 = vmax.f32 %v1918_v42, 0.0 }
 0x361   :  { %v1915_v46 = vpop.f32.mrf.mxu0 }
 0x362   :  { %v1921_v47 = vmax.f32 %v1919_v44, %v1920_v45  ;;  %2617 = vmatpush2.bf16.msra.mxu0 %v3580_v40 }
 0x364   :  { %v1923_v49 = vrot.slane %v1921_v47, 2 }
 0x366   :  { %v1925_v50 = vmax.f32 %v1921_v47, %v1923_v49 }
 0x368   :  { %v1926_v51 = vpack.c.bf16 %v1925_v50, %v1925_v50  ;;  %v1934_v50 = vld [vmem:[%s4221_s10] sm:$0x3] }
 0x36a   :  { %v1930_v53 = vrot.slane %v1926_v51, 7  ;;  %v1939_v51 = vrot.slane %v1934_v50, %v4180_v52 }
 0x36c   :  { %1932 = vst [vmem:[#allocation4] sm:$0x2] %v1930_v53  ;;  %v1943_v53 = vrot.slane %v1934_v50, %v4185_v56 }
 0x373   :  { %v1946_v57 = vld [vmem:[#allocation4] sm:$0x3] }
 0x374   :  { %2076 = vmatmul.mubr.bf16.vlgmr.msra.gmra.mxu1 %v1946_v57 }
 0x375   :  { %2336 = vmatpush1.bf16.msra.mxu1 %v3506_v54  ;;  %2367 = vmatprep.mubr.bf16.mxu1 %v3654_v48  ;;  %v3524_v48 = vld [vmem:[#allocation7 + $0x134] ss:$8 sps:$4 sm:$0xff]  }
 0x376   :  { %2337 = vmatprep.subr.bf16.mxu1 %v3514_v55 }
 0x379   :  { %2338 = vmatpush1.bf16.msra.mxu1 %v3512_v59 }
 0x37a   :  { %2339 = vmatprep.subr.bf16.mxu1 %v3518_v62 }
 0x37b   :  { %v2223_v44 = vpop.f32.mrf.mxu0 }
 0x37d   :  { %2340 = vmatpush1.bf16.msra.mxu1 %v3516_v1  ;;  %v2225_v46 = vpop.f32.mrf.mxu0 }
 0x37e   :  { %2341 = vmatprep.subr.bf16.mxu1 %v3521_v3 }
 0x37f   :  { %v2227_v47 = vpop.f32.mrf.mxu0 }
 0x381   :  { %2342 = vmatpush1.bf16.msra.mxu1 %v3519_v5  ;;  %v2228_v49 = vpop.f32.mrf.mxu0 }
 0x382   :  { %2343 = vmatprep.subr.bf16.mxu1 %v3524_v48  ;;  %v2419_v48 = vrot.slane %v2414_v6, %v4180_v52 }
 0x385   :  { %2344 = vmatpush1.bf16.msra.mxu1 %v3522_v8 }
 0x386   :  { %2345 = vmatprep.subr.bf16.mxu1 %v3527_v10 }
 0x389   :  { %2346 = vmatpush1.bf16.msra.mxu1 %v3525_v12 }
 0x38a   :  { %2347 = vmatprep.subr.bf16.mxu1 %v3530_v14 }
 0x38d   :  { %2348 = vmatpush1.bf16.msra.mxu1 %v3528_v16 }
 0x38e   :  { %2349 = vmatprep.subr.bf16.mxu1 %v3533_v18 }
 0x391   :  { %2350 = vmatpush1.bf16.msra.mxu1 %v3531_v19 }
 0x394   :  { %2368 = vmatmul.mubr.bf16.vlgmr.msra.gmra.mxu1 %v2253_v21 }
 0x434   :  { %v2077_v41 = vpop.f32.mrf.mxu1 }
 0x435   :  { %v2084_v54 = vadd.f32 %v2077_v41, %v1939_v51 }
 0x436   :  { %v2079_v42 = vpop.f32.mrf.mxu1 }
 0x437   :  { %v2085_v55 = vadd.f32 %v2079_v42, %v1943_v53  ;;  %v2230_v57 = vadd.f32 %v2223_v44, %v2084_v54 }
 0x438   :  { %v2081_v43 = vpop.f32.mrf.mxu1 }
 0x439   :  { %v2231_v59 = vadd.f32 %v2225_v46, %v2085_v55 }
 0x43a   :  { %v2082_v45 = vpop.f32.mrf.mxu1 }
 0x454   :  { %v2369_v58 = vpop.f32.mrf.mxu1 }
 0x455   :  { %v2376_v60 = vadd.f32 %v2369_v58, %v2230_v57 }
 0x456   :  { %v2371_v61 = vpop.f32.mrf.mxu1 }
 0x457   :  { %v2377_v62 = vadd.f32 %v2371_v61, %v2231_v59  ;;  %v2378_v63 = vmax.f32 %v2376_v60, 0.0 }
 0x458   :  { %v2373_v1 = vpop.f32.mrf.mxu1 }
 0x459   :  { %v2379_v2 = vmax.f32 %v2377_v62, 0.0  ;;  %v2380_v5 = vpack.c.bf16 %v2378_v63, %v2378_v63 }
 0x45a   :  { %v2374_v3 = vpop.f32.mrf.mxu1 }
 0x45b   :  { %v2381_v4 = vpack.c.bf16 %v2379_v2, %v2379_v2 }
 0x45d   :  { %2618 = vmatprep.mubr.bf16.mxu0 %v2381_v4 }
 0x45e   :  { %2619 = vmatmul.mubr.bf16.vlgmr.msra.gmra.mxu0 %v2380_v5 }
 0x51e   :  { %v2620_v8 = vpop.f32.mrf.mxu0 }
 0x51f   :  { %v2621_v10 = vadd.f32 %v2620_v8, %v2419_v48 }
 0x520   :  { %v2622_v9 = vpop.f32.mrf.mxu0 }
 0x521   :  { %v2623_v11 = vadd.f32 %v2622_v9, %v2423_v7 }
 0x522   :  { %v2624_v12 = vpop.f32.mrf.mxu0 }
 0x523   :  { %v2629_v13 = vcombine.low %v2621_v10, %v2623_v11 }
 0x524   :  { %v2625_v14 = vpop.f32.mrf.mxu0 }
 0x525   :  { %2631 = vst [vmem:[%s4223_s12] sm:$0xff] %v2629_v13 }
 0x526   :  { %2636 = vsyncpa [#allocation6], 1 }
 0x527   :  { %2637 = vsyncpa [#allocation8], 1 }

</bundles_post_ra>
